<compile_context>
chip_gen: v7x
topology: tpu7x:2x2x1
jax: 0.10.0
libtpu: 0.0.40
codegen_flags: <defaults>
</compile_context>

<pallas_src>
import jax
import jax.numpy as jnp
from jax.experimental import pallas as pl
from jax.experimental.pallas import tpu as pltpu

EPS = 1e-5          # BatchNorm2d default eps
LEAKY_SLOPE = 0.1   # LeakyReLU(0.1)
LANES = 128


def _round_up(x, m):
    return (x + m - 1) // m * m


def _auto_row_tile(H, W, cin, cout_p, vmem_budget=20 << 20):
    """Largest row tile dividing H whose per-step VMEM footprint fits the budget."""
    cin_lanes = _round_up(max(cin, 1), LANES)   # channel axis pads to 128 lanes in VMEM
    best = 1
    for th in range(1, H + 1):
        if H % th:
            continue
        per_step = (2 * (th + 2) * (W + 2) * cin_lanes * 2   # double-buffered bf16 input tile
                    + 5 * th * W * cout_p * 4)               # conv-out(x2) + out(x2) + f32 acc scratch
        if per_step <= vmem_budget:
            best = th
    return best


def _conv_stats_kernel(x_ref, w_ref, y_ref, sum_ref, sq_ref, acc_ref):
    """Conv(KHxKW, stride 1) for one (batch, row-tile) block + per-channel partial stats.

    x_ref  : (TH + KH - 1, W + KW - 1, Cin)  halo'd input tile (compute dtype, e.g. bf16)
    w_ref  : (KH, KW, Cin, Cp)               conv weights (compute dtype), resident
    y_ref  : (TH, W, Cp)                     f32 conv output tile
    sum_ref: (1, Cp)                         per-tile channel sum
    sq_ref : (1, Cp)                         per-tile channel sum of squares
    acc_ref: (TH, W, Cp) f32                 VMEM scratch accumulator
    """
    KH, KW, _, _ = w_ref.shape
    TH, W, _ = y_ref.shape

    acc_ref[...] = jnp.zeros_like(acc_ref)
    # 3x3 conv = 9 shifted (Cin -> Cp) matmuls on the MXU, f32 accumulation in VMEM scratch.
    for kh in range(KH):
        for kw in range(KW):
            patch = x_ref[kh:kh + TH, kw:kw + W, :]              # (TH, W, Cin)
            acc_ref[...] += jax.lax.dot_general(
                patch, w_ref[kh, kw],
                dimension_numbers=(((2,), (0,)), ((), ())),
                preferred_element_type=jnp.float32)              # (TH, W, Cp)

    acc = acc_ref[...]
    y_ref[...] = acc
    # Per-tile partial BN statistics (f32), reduced to per-channel in the wrapper.
    sum_ref[...] = jnp.sum(acc, axis=(0, 1), keepdims=True)[0]
    sq_ref[...] = jnp.sum(acc * acc, axis=(0, 1), keepdims=True)[0]


def _bn_act_kernel(y_ref, scale_ref, shift_ref, o_ref):
    """Elementwise normalize + affine + LeakyReLU for one (batch, row-tile) block.

    y_ref    : (TH, W, Cp) f32 conv output tile
    scale/shift: (1, Cp)   precomputed per-channel gamma*rsqrt(var+eps) / beta - mean*scale
    o_ref    : (TH, W, Cp) output tile
    """
    cp = y_ref.shape[-1]
    scale = scale_ref[...].reshape(1, 1, cp)
    shift = shift_ref[...].reshape(1, 1, cp)
    y = y_ref[...] * scale + shift
    o_ref[...] = jnp.maximum(y, LEAKY_SLOPE * y).astype(o_ref.dtype)


def layer_forward(x_nchw, w_oihw, gamma, beta, *, padding=1, row_tile=None,
                  compute_dtype=jnp.bfloat16):
    """Matches PyTorch Layer.forward (training-mode BN). x is NCHW, weight is OIHW."""
    # TODO(synk): only stride=1, square odd kernels with "same"-style padding are supported
    # (the YOLOv1 Layer configuration used here).
    N, Cin, H, W = x_nchw.shape
    Cout, Cin_w, KH, KW = w_oihw.shape
    assert Cin_w == Cin
    assert KH == KW and 2 * padding == KH - 1, "kernel supports stride-1 'same' conv only"

    Cp = _round_up(Cout, LANES)                     # lane-dense output channels
    TH = row_tile if row_tile is not None else _auto_row_tile(H, W, Cin, Cp)
    assert H % TH == 0, f"row_tile {TH} must divide H={H}"
    nt = H // TH
    Wp = W + 2 * padding
    Hh = TH + KH - 1                                # rows per input tile (with halo)

    # --- input prep: NCHW -> NHWC, bf16, zero-pad, duplicate halo rows per tile ---
    # TODO(synk): when chaining layers keep activations NHWC end-to-end; the NCHW<->NHWC
    # transposes here only exist to match the PyTorch interface.
    # TODO(synk): halo rows are duplicated host-side so BlockSpecs stay non-overlapping;
    # a manual-DMA kernel could fetch overlapping row windows straight from HBM instead.
    x_nhwc = jnp.transpose(x_nchw, (0, 2, 3, 1)).astype(compute_dtype)
    xp = jnp.pad(x_nhwc, ((0, 0), (padding, padding), (padding, padding), (0, 0)))
    x_tiles = jnp.stack([xp[:, t * TH: t * TH + Hh] for t in range(nt)], axis=1)
    # x_tiles: (N, nt, Hh, Wp, Cin)

    # --- weight prep: OIHW -> (KH, KW, Cin, Cp), bf16, zero-padded output channels ---
    w_hwio = jnp.transpose(w_oihw, (2, 3, 1, 0))
    w_p = jnp.pad(w_hwio, ((0, 0), (0, 0), (0, 0), (0, Cp - Cout))).astype(compute_dtype)

    grid = (N, nt)
    cparams = pltpu.CompilerParams(
        dimension_semantics=("parallel", "parallel"),
        vmem_limit_bytes=48 * 1024 * 1024)

    # ---------------- pass 1: conv + per-tile channel statistics ----------------
    conv_f32, part_sum, part_sq = pl.pallas_call(
        _conv_stats_kernel,
        grid=grid,
        in_specs=[
            pl.BlockSpec((None, None, Hh, Wp, Cin), lambda n, t: (n, t, 0, 0, 0)),
            pl.BlockSpec((KH, KW, Cin, Cp), lambda n, t: (0, 0, 0, 0)),
        ],
        out_specs=(
            pl.BlockSpec((None, TH, W, Cp), lambda n, t: (n, t, 0, 0)),
            pl.BlockSpec((None, None, 1, Cp), lambda n, t: (n, t, 0, 0)),
            pl.BlockSpec((None, None, 1, Cp), lambda n, t: (n, t, 0, 0)),
        ),
        out_shape=(
            jax.ShapeDtypeStruct((N, H, W, Cp), jnp.float32),
            jax.ShapeDtypeStruct((N, nt, 1, Cp), jnp.float32),
            jax.ShapeDtypeStruct((N, nt, 1, Cp), jnp.float32),
        ),
        scratch_shapes=[pltpu.VMEM((TH, W, Cp), jnp.float32)],
        compiler_params=cparams,
    )(x_tiles, w_p)

    # --- tiny per-channel BN math (f32, outside the kernel) ---
    cnt = float(N * H * W)
    mean = jnp.sum(part_sum, axis=(0, 1, 2)) / cnt                       # (Cp,)
    var = jnp.maximum(jnp.sum(part_sq, axis=(0, 1, 2)) / cnt - mean * mean, 0.0)
    gamma_p = jnp.pad(gamma.astype(jnp.float32), (0, Cp - Cout))
    beta_p = jnp.pad(beta.astype(jnp.float32), (0, Cp - Cout))
    scale = gamma_p * jax.lax.rsqrt(var + EPS)
    shift = beta_p - mean * scale

    # ---------------- pass 2: normalize + affine + LeakyReLU ----------------
    out_p = pl.pallas_call(
        _bn_act_kernel,
        grid=grid,
        in_specs=[
            pl.BlockSpec((None, TH, W, Cp), lambda n, t: (n, t, 0, 0)),
            pl.BlockSpec((1, Cp), lambda n, t: (0, 0)),
            pl.BlockSpec((1, Cp), lambda n, t: (0, 0)),
        ],
        out_specs=pl.BlockSpec((None, TH, W, Cp), lambda n, t: (n, t, 0, 0)),
        out_shape=jax.ShapeDtypeStruct((N, H, W, Cp), x_nchw.dtype),
        compiler_params=cparams,
    )(conv_f32, scale.reshape(1, Cp), shift.reshape(1, Cp))

    out_nhwc = out_p[..., :Cout]
    return jnp.transpose(out_nhwc, (0, 3, 1, 2))     # back to NCHW


def reference_forward(x_nchw, w_oihw, gamma, beta, padding=1):
    """Pure-JAX f32 reference (lax conv + training-mode BN + leaky relu)."""
    y = jax.lax.conv_general_dilated(
        x_nchw, w_oihw, window_strides=(1, 1),
        padding=((padding, padding), (padding, padding)),
        dimension_numbers=("NCHW", "OIHW", "NCHW"),
        precision=jax.lax.Precision.HIGHEST)
    mean = y.mean(axis=(0, 2, 3), keepdims=True)
    var = ((y - mean) ** 2).mean(axis=(0, 2, 3), keepdims=True)
    yn = (y - mean) / jnp.sqrt(var + EPS)
    yn = yn * gamma.reshape(1, -1, 1, 1) + beta.reshape(1, -1, 1, 1)
    return jnp.where(yn > 0, yn, LEAKY_SLOPE * yn)


if __name__ == "__main__":
    key = jax.random.PRNGKey(0)
    k_x, k_w, k_g, k_b = jax.random.split(key, 4)

    N, Cin, Cout, H, W, K = 2, 4, 8, 16, 16, 3

    x = jax.random.normal(k_x, (N, Cin, H, W), jnp.float32)
    w = jax.random.normal(k_w, (Cout, Cin, K, K), jnp.float32) * 0.1  # Conv2d weight (bias=False)
    gamma = 1.0 + 0.1 * jax.random.normal(k_g, (Cout,), jnp.float32)  # BN weight
    beta = 0.1 * jax.random.normal(k_b, (Cout,), jnp.float32)         # BN bias

    out = layer_forward(x, w, gamma, beta, padding=1, row_tile=8)     # 2 row tiles -> grid (2, 2)
    out = jax.block_until_ready(out)

    ref = reference_forward(x, w, gamma, beta, padding=1)
    assert out.shape == (N, Cout, H, W), out.shape
    # Tolerance reflects bf16 MXU operands (f32 accumulation / f32 BN math).
    assert jnp.allclose(out, ref, atol=3e-2, rtol=3e-2), float(jnp.max(jnp.abs(out - ref)))

    print("KERNEL_OK")
</pallas_src>

<mosaic_0001>
module attributes {stable_mosaic.version = 11 : i64} {
  func.func @_conv_stats_kernel(%arg0: i32, %arg1: i32, %arg2: memref<1x1x10x18x4xbf16, #tpu.memory_space<vmem>>, %arg3: memref<3x3x4x128xbf16, #tpu.memory_space<vmem>>, %arg4: memref<1x8x16x128xf32, #tpu.memory_space<vmem>>, %arg5: memref<1x1x1x128xf32, #tpu.memory_space<vmem>>, %arg6: memref<1x1x1x128xf32, #tpu.memory_space<vmem>>, %arg7: memref<8x16x128xf32, #tpu.memory_space<vmem>>) attributes {dimension_semantics = [#tpu.dimension_semantics<parallel>, #tpu.dimension_semantics<parallel>], iteration_bounds = array<i64: 2, 2>, scalar_prefetch = 0 : i64, scratch_operands = 1 : i64, tpu.core_type = #tpu.core_type<tc>, window_params = [{transform_indices = @transform_0, window_bounds = array<i64: 1, 1, 10, 18, 4>}, {pipeline_mode = #tpu.pipeline_mode<synchronous>, transform_indices = @transform_1, window_bounds = array<i64: 3, 3, 4, 128>}, {transform_indices = @transform_2, window_bounds = array<i64: 1, 8, 16, 128>}, {transform_indices = @transform_3, window_bounds = array<i64: 1, 1, 1, 128>}, {transform_indices = @transform_4, window_bounds = array<i64: 1, 1, 1, 128>}]} {
    %cst = arith.constant 0.000000e+00 : f32
    %0 = vector.broadcast %cst : f32 to vector<8x16x128xf32>
    %c0 = arith.constant 0 : index
    %c0_0 = arith.constant 0 : index
    %c0_1 = arith.constant 0 : index
    %1 = vector.load %arg7[%c0, %c0_0, %c0_1] : memref<8x16x128xf32, #tpu.memory_space<vmem>>, vector<8x16x128xf32>
    tpu.vector_store %arg7[%c0, %c0_0, %c0_1], %0 {strides = array<i32>} : memref<8x16x128xf32, #tpu.memory_space<vmem>>, vector<8x16x128xf32>,
    %c0_2 = arith.constant 0 : index
    %c0_3 = arith.constant 0 : index
    %c0_4 = arith.constant 0 : index
    %c0_5 = arith.constant 0 : index
    %c0_6 = arith.constant 0 : index
    %2 = vector.load %arg2[%c0_2, %c0_3, %c0_4, %c0_5, %c0_6] : memref<1x1x10x18x4xbf16, #tpu.memory_space<vmem>>, vector<1x1x8x16x4xbf16>
    %3 = vector.shape_cast %2 : vector<1x1x8x16x4xbf16> to vector<8x16x4xbf16>
    %c0_7 = arith.constant 0 : index
    %c0_8 = arith.constant 0 : index
    %c0_9 = arith.constant 0 : index
    %4 = vector.load %arg7[%c0_7, %c0_8, %c0_9] : memref<8x16x128xf32, #tpu.memory_space<vmem>>, vector<8x16x128xf32>
    %c0_10 = arith.constant 0 : index
    %c0_11 = arith.constant 0 : index
    %c0_12 = arith.constant 0 : index
    %c0_13 = arith.constant 0 : index
    %5 = vector.load %arg3[%c0_10, %c0_11, %c0_12, %c0_13] : memref<3x3x4x128xbf16, #tpu.memory_space<vmem>>, vector<1x1x4x128xbf16>
    %6 = vector.shape_cast %5 : vector<1x1x4x128xbf16> to vector<4x128xbf16>
    %cst_14 = arith.constant dense<0.000000e+00> : vector<8x16x128xf32>
    %7 = tpu.matmul %3, %6, %cst_14 {dimension_numbers = #tpu.dot_dimension_numbers<[2], [0], [0, 1], [1], [0, 0, 0, 1, 1, 1], [], []>} : vector<8x16x4xbf16>, vector<4x128xbf16>, vector<8x16x128xf32> -> vector<8x16x128xf32>
    %8 = arith.addf %4, %7 : vector<8x16x128xf32>
    %c0_15 = arith.constant 0 : index
    %c0_16 = arith.constant 0 : index
    %c0_17 = arith.constant 0 : index
    %9 = vector.load %arg7[%c0_15, %c0_16, %c0_17] : memref<8x16x128xf32, #tpu.memory_space<vmem>>, vector<8x16x128xf32>
    tpu.vector_store %arg7[%c0_15, %c0_16, %c0_17], %8 {strides = array<i32>} : memref<8x16x128xf32, #tpu.memory_space<vmem>>, vector<8x16x128xf32>,
    %c0_18 = arith.constant 0 : index
    %c0_19 = arith.constant 0 : index
    %c0_20 = arith.constant 0 : index
    %c1 = arith.constant 1 : index
    %c0_21 = arith.constant 0 : index
    %10 = vector.load %arg2[%c0_18, %c0_19, %c0_20, %c1, %c0_21] : memref<1x1x10x18x4xbf16, #tpu.memory_space<vmem>>, vector<1x1x8x16x4xbf16>
    %11 = vector.shape_cast %10 : vector<1x1x8x16x4xbf16> to vector<8x16x4xbf16>
    %c0_22 = arith.constant 0 : index
    %c0_23 = arith.constant 0 : index
    %c0_24 = arith.constant 0 : index
    %12 = vector.load %arg7[%c0_22, %c0_23, %c0_24] : memref<8x16x128xf32, #tpu.memory_space<vmem>>, vector<8x16x128xf32>
    %c0_25 = arith.constant 0 : index
    %c1_26 = arith.constant 1 : index
    %c0_27 = arith.constant 0 : index
    %c0_28 = arith.constant 0 : index
    %13 = vector.load %arg3[%c0_25, %c1_26, %c0_27, %c0_28] : memref<3x3x4x128xbf16, #tpu.memory_space<vmem>>, vector<1x1x4x128xbf16>
    %14 = vector.shape_cast %13 : vector<1x1x4x128xbf16> to vector<4x128xbf16>
    %cst_29 = arith.constant dense<0.000000e+00> : vector<8x16x128xf32>
    %15 = tpu.matmul %11, %14, %cst_29 {dimension_numbers = #tpu.dot_dimension_numbers<[2], [0], [0, 1], [1], [0, 0, 0, 1, 1, 1], [], []>} : vector<8x16x4xbf16>, vector<4x128xbf16>, vector<8x16x128xf32> -> vector<8x16x128xf32>
    %16 = arith.addf %12, %15 : vector<8x16x128xf32>
    %c0_30 = arith.constant 0 : index
    %c0_31 = arith.constant 0 : index
    %c0_32 = arith.constant 0 : index
    %17 = vector.load %arg7[%c0_30, %c0_31, %c0_32] : memref<8x16x128xf32, #tpu.memory_space<vmem>>, vector<8x16x128xf32>
    tpu.vector_store %arg7[%c0_30, %c0_31, %c0_32], %16 {strides = array<i32>} : memref<8x16x128xf32, #tpu.memory_space<vmem>>, vector<8x16x128xf32>,
    %c0_33 = arith.constant 0 : index
    %c0_34 = arith.constant 0 : index
    %c0_35 = arith.constant 0 : index
    %c2 = arith.constant 2 : index
    %c0_36 = arith.constant 0 : index
    %18 = vector.load %arg2[%c0_33, %c0_34, %c0_35, %c2, %c0_36] : memref<1x1x10x18x4xbf16, #tpu.memory_space<vmem>>, vector<1x1x8x16x4xbf16>
    %19 = vector.shape_cast %18 : vector<1x1x8x16x4xbf16> to vector<8x16x4xbf16>
    %c0_37 = arith.constant 0 : index
    %c0_38 = arith.constant 0 : index
    %c0_39 = arith.constant 0 : index
    %20 = vector.load %arg7[%c0_37, %c0_38, %c0_39] : memref<8x16x128xf32, #tpu.memory_space<vmem>>, vector<8x16x128xf32>
    %c0_40 = arith.constant 0 : index
    %c2_41 = arith.constant 2 : index
    %c0_42 = arith.constant 0 : index
    %c0_43 = arith.constant 0 : index
    %21 = vector.load %arg3[%c0_40, %c2_41, %c0_42, %c0_43] : memref<3x3x4x128xbf16, #tpu.memory_space<vmem>>, vector<1x1x4x128xbf16>
    %22 = vector.shape_cast %21 : vector<1x1x4x128xbf16> to vector<4x128xbf16>
    %cst_44 = arith.constant dense<0.000000e+00> : vector<8x16x128xf32>
    %23 = tpu.matmul %19, %22, %cst_44 {dimension_numbers = #tpu.dot_dimension_numbers<[2], [0], [0, 1], [1], [0, 0, 0, 1, 1, 1], [], []>} : vector<8x16x4xbf16>, vector<4x128xbf16>, vector<8x16x128xf32> -> vector<8x16x128xf32>
    %24 = arith.addf %20, %23 : vector<8x16x128xf32>
    %c0_45 = arith.constant 0 : index
    %c0_46 = arith.constant 0 : index
    %c0_47 = arith.constant 0 : index
    %25 = vector.load %arg7[%c0_45, %c0_46, %c0_47] : memref<8x16x128xf32, #tpu.memory_space<vmem>>, vector<8x16x128xf32>
    tpu.vector_store %arg7[%c0_45, %c0_46, %c0_47], %24 {strides = array<i32>} : memref<8x16x128xf32, #tpu.memory_space<vmem>>, vector<8x16x128xf32>,
    %c0_48 = arith.constant 0 : index
    %c0_49 = arith.constant 0 : index
    %c1_50 = arith.constant 1 : index
    %c0_51 = arith.constant 0 : index
    %c0_52 = arith.constant 0 : index
    %26 = vector.load %arg2[%c0_48, %c0_49, %c1_50, %c0_51, %c0_52] : memref<1x1x10x18x4xbf16, #tpu.memory_space<vmem>>, vector<1x1x8x16x4xbf16>
    %27 = vector.shape_cast %26 : vector<1x1x8x16x4xbf16> to vector<8x16x4xbf16>
    %c0_53 = arith.constant 0 : index
    %c0_54 = arith.constant 0 : index
    %c0_55 = arith.constant 0 : index
    %28 = vector.load %arg7[%c0_53, %c0_54, %c0_55] : memref<8x16x128xf32, #tpu.memory_space<vmem>>, vector<8x16x128xf32>
    %c1_56 = arith.constant 1 : index
    %c0_57 = arith.constant 0 : index
    %c0_58 = arith.constant 0 : index
    %c0_59 = arith.constant 0 : index
    %29 = vector.load %arg3[%c1_56, %c0_57, %c0_58, %c0_59] : memref<3x3x4x128xbf16, #tpu.memory_space<vmem>>, vector<1x1x4x128xbf16>
    %30 = vector.shape_cast %29 : vector<1x1x4x128xbf16> to vector<4x128xbf16>
    %cst_60 = arith.constant dense<0.000000e+00> : vector<8x16x128xf32>
    %31 = tpu.matmul %27, %30, %cst_60 {dimension_numbers = #tpu.dot_dimension_numbers<[2], [0], [0, 1], [1], [0, 0, 0, 1, 1, 1], [], []>} : vector<8x16x4xbf16>, vector<4x128xbf16>, vector<8x16x128xf32> -> vector<8x16x128xf32>
    %32 = arith.addf %28, %31 : vector<8x16x128xf32>
    %c0_61 = arith.constant 0 : index
    %c0_62 = arith.constant 0 : index
    %c0_63 = arith.constant 0 : index
    %33 = vector.load %arg7[%c0_61, %c0_62, %c0_63] : memref<8x16x128xf32, #tpu.memory_space<vmem>>, vector<8x16x128xf32>
    tpu.vector_store %arg7[%c0_61, %c0_62, %c0_63], %32 {strides = array<i32>} : memref<8x16x128xf32, #tpu.memory_space<vmem>>, vector<8x16x128xf32>,
    %c0_64 = arith.constant 0 : index
    %c0_65 = arith.constant 0 : index
    %c1_66 = arith.constant 1 : index
    %c1_67 = arith.constant 1 : index
    %c0_68 = arith.constant 0 : index
    %34 = vector.load %arg2[%c0_64, %c0_65, %c1_66, %c1_67, %c0_68] : memref<1x1x10x18x4xbf16, #tpu.memory_space<vmem>>, vector<1x1x8x16x4xbf16>
    %35 = vector.shape_cast %34 : vector<1x1x8x16x4xbf16> to vector<8x16x4xbf16>
    %c0_69 = arith.constant 0 : index
    %c0_70 = arith.constant 0 : index
    %c0_71 = arith.constant 0 : index
    %36 = vector.load %arg7[%c0_69, %c0_70, %c0_71] : memref<8x16x128xf32, #tpu.memory_space<vmem>>, vector<8x16x128xf32>
    %c1_72 = arith.constant 1 : index
    %c1_73 = arith.constant 1 : index
    %c0_74 = arith.constant 0 : index
    %c0_75 = arith.constant 0 : index
    %37 = vector.load %arg3[%c1_72, %c1_73, %c0_74, %c0_75] : memref<3x3x4x128xbf16, #tpu.memory_space<vmem>>, vector<1x1x4x128xbf16>
    %38 = vector.shape_cast %37 : vector<1x1x4x128xbf16> to vector<4x128xbf16>
    %cst_76 = arith.constant dense<0.000000e+00> : vector<8x16x128xf32>
    %39 = tpu.matmul %35, %38, %cst_76 {dimension_numbers = #tpu.dot_dimension_numbers<[2], [0], [0, 1], [1], [0, 0, 0, 1, 1, 1], [], []>} : vector<8x16x4xbf16>, vector<4x128xbf16>, vector<8x16x128xf32> -> vector<8x16x128xf32>
    %40 = arith.addf %36, %39 : vector<8x16x128xf32>
    %c0_77 = arith.constant 0 : index
    %c0_78 = arith.constant 0 : index
    %c0_79 = arith.constant 0 : index
    %41 = vector.load %arg7[%c0_77, %c0_78, %c0_79] : memref<8x16x128xf32, #tpu.memory_space<vmem>>, vector<8x16x128xf32>
    tpu.vector_store %arg7[%c0_77, %c0_78, %c0_79], %40 {strides = array<i32>} : memref<8x16x128xf32, #tpu.memory_space<vmem>>, vector<8x16x128xf32>,
    %c0_80 = arith.constant 0 : index
    %c0_81 = arith.constant 0 : index
    %c1_82 = arith.constant 1 : index
    %c2_83 = arith.constant 2 : index
    %c0_84 = arith.constant 0 : index
    %42 = vector.load %arg2[%c0_80, %c0_81, %c1_82, %c2_83, %c0_84] : memref<1x1x10x18x4xbf16, #tpu.memory_space<vmem>>, vector<1x1x8x16x4xbf16>
    %43 = vector.shape_cast %42 : vector<1x1x8x16x4xbf16> to vector<8x16x4xbf16>
    %c0_85 = arith.constant 0 : index
    %c0_86 = arith.constant 0 : index
    %c0_87 = arith.constant 0 : index
    %44 = vector.load %arg7[%c0_85, %c0_86, %c0_87] : memref<8x16x128xf32, #tpu.memory_space<vmem>>, vector<8x16x128xf32>
    %c1_88 = arith.constant 1 : index
    %c2_89 = arith.constant 2 : index
    %c0_90 = arith.constant 0 : index
    %c0_91 = arith.constant 0 : index
    %45 = vector.load %arg3[%c1_88, %c2_89, %c0_90, %c0_91] : memref<3x3x4x128xbf16, #tpu.memory_space<vmem>>, vector<1x1x4x128xbf16>
    %46 = vector.shape_cast %45 : vector<1x1x4x128xbf16> to vector<4x128xbf16>
    %cst_92 = arith.constant dense<0.000000e+00> : vector<8x16x128xf32>
    %47 = tpu.matmul %43, %46, %cst_92 {dimension_numbers = #tpu.dot_dimension_numbers<[2], [0], [0, 1], [1], [0, 0, 0, 1, 1, 1], [], []>} : vector<8x16x4xbf16>, vector<4x128xbf16>, vector<8x16x128xf32> -> vector<8x16x128xf32>
    %48 = arith.addf %44, %47 : vector<8x16x128xf32>
    %c0_93 = arith.constant 0 : index
    %c0_94 = arith.constant 0 : index
    %c0_95 = arith.constant 0 : index
    %49 = vector.load %arg7[%c0_93, %c0_94, %c0_95] : memref<8x16x128xf32, #tpu.memory_space<vmem>>, vector<8x16x128xf32>
    tpu.vector_store %arg7[%c0_93, %c0_94, %c0_95], %48 {strides = array<i32>} : memref<8x16x128xf32, #tpu.memory_space<vmem>>, vector<8x16x128xf32>,
    %c0_96 = arith.constant 0 : index
    %c0_97 = arith.constant 0 : index
    %c2_98 = arith.constant 2 : index
    %c0_99 = arith.constant 0 : index
    %c0_100 = arith.constant 0 : index
    %50 = vector.load %arg2[%c0_96, %c0_97, %c2_98, %c0_99, %c0_100] : memref<1x1x10x18x4xbf16, #tpu.memory_space<vmem>>, vector<1x1x8x16x4xbf16>
    %51 = vector.shape_cast %50 : vector<1x1x8x16x4xbf16> to vector<8x16x4xbf16>
    %c0_101 = arith.constant 0 : index
    %c0_102 = arith.constant 0 : index
    %c0_103 = arith.constant 0 : index
    %52 = vector.load %arg7[%c0_101, %c0_102, %c0_103] : memref<8x16x128xf32, #tpu.memory_space<vmem>>, vector<8x16x128xf32>
    %c2_104 = arith.constant 2 : index
    %c0_105 = arith.constant 0 : index
    %c0_106 = arith.constant 0 : index
    %c0_107 = arith.constant 0 : index
    %53 = vector.load %arg3[%c2_104, %c0_105, %c0_106, %c0_107] : memref<3x3x4x128xbf16, #tpu.memory_space<vmem>>, vector<1x1x4x128xbf16>
    %54 = vector.shape_cast %53 : vector<1x1x4x128xbf16> to vector<4x128xbf16>
    %cst_108 = arith.constant dense<0.000000e+00> : vector<8x16x128xf32>
    %55 = tpu.matmul %51, %54, %cst_108 {dimension_numbers = #tpu.dot_dimension_numbers<[2], [0], [0, 1], [1], [0, 0, 0, 1, 1, 1], [], []>} : vector<8x16x4xbf16>, vector<4x128xbf16>, vector<8x16x128xf32> -> vector<8x16x128xf32>
    %56 = arith.addf %52, %55 : vector<8x16x128xf32>
    %c0_109 = arith.constant 0 : index
    %c0_110 = arith.constant 0 : index
    %c0_111 = arith.constant 0 : index
    %57 = vector.load %arg7[%c0_109, %c0_110, %c0_111] : memref<8x16x128xf32, #tpu.memory_space<vmem>>, vector<8x16x128xf32>
    tpu.vector_store %arg7[%c0_109, %c0_110, %c0_111], %56 {strides = array<i32>} : memref<8x16x128xf32, #tpu.memory_space<vmem>>, vector<8x16x128xf32>,
    %c0_112 = arith.constant 0 : index
    %c0_113 = arith.constant 0 : index
    %c2_114 = arith.constant 2 : index
    %c1_115 = arith.constant 1 : index
    %c0_116 = arith.constant 0 : index
    %58 = vector.load %arg2[%c0_112, %c0_113, %c2_114, %c1_115, %c0_116] : memref<1x1x10x18x4xbf16, #tpu.memory_space<vmem>>, vector<1x1x8x16x4xbf16>
    %59 = vector.shape_cast %58 : vector<1x1x8x16x4xbf16> to vector<8x16x4xbf16>
    %c0_117 = arith.constant 0 : index
    %c0_118 = arith.constant 0 : index
    %c0_119 = arith.constant 0 : index
    %60 = vector.load %arg7[%c0_117, %c0_118, %c0_119] : memref<8x16x128xf32, #tpu.memory_space<vmem>>, vector<8x16x128xf32>
    %c2_120 = arith.constant 2 : index
    %c1_121 = arith.constant 1 : index
    %c0_122 = arith.constant 0 : index
    %c0_123 = arith.constant 0 : index
    %61 = vector.load %arg3[%c2_120, %c1_121, %c0_122, %c0_123] : memref<3x3x4x128xbf16, #tpu.memory_space<vmem>>, vector<1x1x4x128xbf16>
    %62 = vector.shape_cast %61 : vector<1x1x4x128xbf16> to vector<4x128xbf16>
    %cst_124 = arith.constant dense<0.000000e+00> : vector<8x16x128xf32>
    %63 = tpu.matmul %59, %62, %cst_124 {dimension_numbers = #tpu.dot_dimension_numbers<[2], [0], [0, 1], [1], [0, 0, 0, 1, 1, 1], [], []>} : vector<8x16x4xbf16>, vector<4x128xbf16>, vector<8x16x128xf32> -> vector<8x16x128xf32>
    %64 = arith.addf %60, %63 : vector<8x16x128xf32>
    %c0_125 = arith.constant 0 : index
    %c0_126 = arith.constant 0 : index
    %c0_127 = arith.constant 0 : index
    %65 = vector.load %arg7[%c0_125, %c0_126, %c0_127] : memref<8x16x128xf32, #tpu.memory_space<vmem>>, vector<8x16x128xf32>
    tpu.vector_store %arg7[%c0_125, %c0_126, %c0_127], %64 {strides = array<i32>} : memref<8x16x128xf32, #tpu.memory_space<vmem>>, vector<8x16x128xf32>,
    %c0_128 = arith.constant 0 : index
    %c0_129 = arith.constant 0 : index
    %c2_130 = arith.constant 2 : index
    %c2_131 = arith.constant 2 : index
    %c0_132 = arith.constant 0 : index
    %66 = vector.load %arg2[%c0_128, %c0_129, %c2_130, %c2_131, %c0_132] : memref<1x1x10x18x4xbf16, #tpu.memory_space<vmem>>, vector<1x1x8x16x4xbf16>
    %67 = vector.shape_cast %66 : vector<1x1x8x16x4xbf16> to vector<8x16x4xbf16>
    %c0_133 = arith.constant 0 : index
    %c0_134 = arith.constant 0 : index
    %c0_135 = arith.constant 0 : index
    %68 = vector.load %arg7[%c0_133, %c0_134, %c0_135] : memref<8x16x128xf32, #tpu.memory_space<vmem>>, vector<8x16x128xf32>
    %c2_136 = arith.constant 2 : index
    %c2_137 = arith.constant 2 : index
    %c0_138 = arith.constant 0 : index
    %c0_139 = arith.constant 0 : index
    %69 = vector.load %arg3[%c2_136, %c2_137, %c0_138, %c0_139] : memref<3x3x4x128xbf16, #tpu.memory_space<vmem>>, vector<1x1x4x128xbf16>
    %70 = vector.shape_cast %69 : vector<1x1x4x128xbf16> to vector<4x128xbf16>
    %cst_140 = arith.constant dense<0.000000e+00> : vector<8x16x128xf32>
    %71 = tpu.matmul %67, %70, %cst_140 {dimension_numbers = #tpu.dot_dimension_numbers<[2], [0], [0, 1], [1], [0, 0, 0, 1, 1, 1], [], []>} : vector<8x16x4xbf16>, vector<4x128xbf16>, vector<8x16x128xf32> -> vector<8x16x128xf32>
    %72 = arith.addf %68, %71 : vector<8x16x128xf32>
    %c0_141 = arith.constant 0 : index
    %c0_142 = arith.constant 0 : index
    %c0_143 = arith.constant 0 : index
    %73 = vector.load %arg7[%c0_141, %c0_142, %c0_143] : memref<8x16x128xf32, #tpu.memory_space<vmem>>, vector<8x16x128xf32>
    tpu.vector_store %arg7[%c0_141, %c0_142, %c0_143], %72 {strides = array<i32>} : memref<8x16x128xf32, #tpu.memory_space<vmem>>, vector<8x16x128xf32>,
    %c0_144 = arith.constant 0 : index
    %c0_145 = arith.constant 0 : index
    %c0_146 = arith.constant 0 : index
    %74 = vector.load %arg7[%c0_144, %c0_145, %c0_146] : memref<8x16x128xf32, #tpu.memory_space<vmem>>, vector<8x16x128xf32>
    %c0_147 = arith.constant 0 : index
    %c0_148 = arith.constant 0 : index
    %c0_149 = arith.constant 0 : index
    %c0_150 = arith.constant 0 : index
    %75 = vector.load %arg4[%c0_147, %c0_148, %c0_149, %c0_150] : memref<1x8x16x128xf32, #tpu.memory_space<vmem>>, vector<1x8x16x128xf32>
    %76 = vector.shape_cast %75 : vector<1x8x16x128xf32> to vector<8x16x128xf32>
    %77 = vector.shape_cast %74 : vector<8x16x128xf32> to vector<1x8x16x128xf32>
    tpu.vector_store %arg4[%c0_147, %c0_148, %c0_149, %c0_150], %77 {strides = array<i32>} : memref<1x8x16x128xf32, #tpu.memory_space<vmem>>, vector<1x8x16x128xf32>,
    %cst_151 = arith.constant dense<0.000000e+00> : vector<128xf32>
    %78 = vector.multi_reduction <add>, %74, %cst_151 [0, 1] : vector<8x16x128xf32> to vector<128xf32>
    %79 = vector.shape_cast %78 : vector<128xf32> to vector<1x1x128xf32>
    %80 = vector.shape_cast %79 : vector<1x1x128xf32> to vector<1x128xf32>
    %c0_152 = arith.constant 0 : index
    %c0_153 = arith.constant 0 : index
    %c0_154 = arith.constant 0 : index
    %c0_155 = arith.constant 0 : index
    %81 = vector.load %arg5[%c0_152, %c0_153, %c0_154, %c0_155] : memref<1x1x1x128xf32, #tpu.memory_space<vmem>>, vector<1x1x1x128xf32>
    %82 = vector.shape_cast %81 : vector<1x1x1x128xf32> to vector<1x128xf32>
    %83 = vector.shape_cast %80 : vector<1x128xf32> to vector<1x1x1x128xf32>
    tpu.vector_store %arg5[%c0_152, %c0_153, %c0_154, %c0_155], %83 {strides = array<i32>} : memref<1x1x1x128xf32, #tpu.memory_space<vmem>>, vector<1x1x1x128xf32>,
    %84 = arith.mulf %74, %74 : vector<8x16x128xf32>
    %cst_156 = arith.constant dense<0.000000e+00> : vector<128xf32>
    %85 = vector.multi_reduction <add>, %84, %cst_156 [0, 1] : vector<8x16x128xf32> to vector<128xf32>
    %86 = vector.shape_cast %85 : vector<128xf32> to vector<1x1x128xf32>
    %87 = vector.shape_cast %86 : vector<1x1x128xf32> to vector<1x128xf32>
    %c0_157 = arith.constant 0 : index
    %c0_158 = arith.constant 0 : index
    %c0_159 = arith.constant 0 : index
    %c0_160 = arith.constant 0 : index
    %88 = vector.load %arg6[%c0_157, %c0_158, %c0_159, %c0_160] : memref<1x1x1x128xf32, #tpu.memory_space<vmem>>, vector<1x1x1x128xf32>
    %89 = vector.shape_cast %88 : vector<1x1x1x128xf32> to vector<1x128xf32>
    %90 = vector.shape_cast %87 : vector<1x128xf32> to vector<1x1x1x128xf32>
    tpu.vector_store %arg6[%c0_157, %c0_158, %c0_159, %c0_160], %90 {strides = array<i32>} : memref<1x1x1x128xf32, #tpu.memory_space<vmem>>, vector<1x1x1x128xf32>,
    return
  }
  func.func @transform_0(%arg0: i32, %arg1: i32) -> (i32, i32, i32, i32, i32) {
    %c0_i32 = arith.constant 0 : i32
    %c0_i32_0 = arith.constant 0 : i32
    %c0_i32_1 = arith.constant 0 : i32
    %c0_i32_2 = arith.constant 0 : i32
    return %arg0, %arg1, %c0_i32, %c0_i32_0, %c0_i32_1 : i32, i32, i32, i32, i32
  }
  func.func @transform_1(%arg0: i32, %arg1: i32) -> (i32, i32, i32, i32) {
    %c0_i32 = arith.constant 0 : i32
    %c0_i32_0 = arith.constant 0 : i32
    %c0_i32_1 = arith.constant 0 : i32
    %c0_i32_2 = arith.constant 0 : i32
    %c0_i32_3 = arith.constant 0 : i32
    return %c0_i32, %c0_i32_0, %c0_i32_1, %c0_i32_2 : i32, i32, i32, i32
  }
  func.func @transform_2(%arg0: i32, %arg1: i32) -> (i32, i32, i32, i32) {
    %c0_i32 = arith.constant 0 : i32
    %c0_i32_0 = arith.constant 0 : i32
    %c0_i32_1 = arith.constant 0 : i32
    return %arg0, %arg1, %c0_i32, %c0_i32_0 : i32, i32, i32, i32
  }
  func.func @transform_3(%arg0: i32, %arg1: i32) -> (i32, i32, i32, i32) {
    %c0_i32 = arith.constant 0 : i32
    %c0_i32_0 = arith.constant 0 : i32
    %c0_i32_1 = arith.constant 0 : i32
    return %arg0, %arg1, %c0_i32, %c0_i32_0 : i32, i32, i32, i32
  }
  func.func @transform_4(%arg0: i32, %arg1: i32) -> (i32, i32, i32, i32) {
    %c0_i32 = arith.constant 0 : i32
    %c0_i32_0 = arith.constant 0 : i32
    %c0_i32_1 = arith.constant 0 : i32
    return %arg0, %arg1, %c0_i32, %c0_i32_0 : i32, i32, i32, i32
  }
}

</mosaic_0001>

<bundles_post_ra>
// kernel: tpu_custom_call.1
= control target key start
LH: loop header
LB: loop body
LE: loop exit
PB: predicated region body
PF: predicated region fallthrough
CT: control target
= control target key end

     0   :  { %10 = vsyncpa [#allocation4], 0  ;;  %s5244_s0 = inlined_call_operand.vmem [shape: bf16[2,2,10,18,4], index: 0, kind: input, shape index: {}]   ;;  %s5245_s1 = inlined_call_operand.vmem [shape: bf16[3,3,4,128], index: 1, kind: input, shape index: {}]   ;;  %s5246_s2 = inlined_call_operand.hbm [shape: f32[2,16,16,128], index: 2, kind: output, shape index: {0}]   ;;  %s5247_s3 = inlined_call_operand.hbm [shape: f32[2,2,1,128], index: 3, kind: output, shape index: {1}]   ;;  %s5248_s4 = inlined_call_operand.hbm [shape: f32[2,2,1,128], index: 4, kind: output, shape index: {2}]  }
   0x1   :  { %12 = vsyncpa [#allocation4 + $0x1], 0 }
   0x2   :  { %13 = vsyncpa [#allocation6], 0 }
   0x3   :  { %15 = vsyncpa [#allocation6 + $0x1], 0  ;;  %s4400_s15 = smov 0   ;;  %s4402_s16 = smov 0  }
   0x4   :  { %s4404_s17 = smov 0   ;;  %s4406_s18 = smov 0  }
   0x5   :  { %s4408_s19 = smov 0   ;;  %s4410_s20 = smov 0  }
   0x6   :  { %s4412_s21 = smov 0   ;;  %s4414_s22 = smov 0  }
   0x7 LB: > { %s3398_s23 = sadd.s32 4294967295, %s4368_s22   ;;  %s5249_s24 = sadd.s32 4294967294, %s4368_s22   ;;  %s4368_s22 = sphi %s4414_s22, %s21_s22   ;;  %s4364_s21 = sphi %s4412_s21, %s5265_s21   ;;  %s4360_s20 = sphi %s4410_s20, %s5264_s20   ;;  %s4356_s19 = sphi %s4408_s19, %s5263_s19   ;;  %s4352_s18 = sphi %s4406_s18, %s5262_s18   ;;  %s4348_s17 = sphi %s4404_s17, %s5261_s17   ;;  %s4344_s16 = sphi %s4402_s16, %s5260_s16   ;;  %s4340_s15 = sphi %s4400_s15, %s5259_s15  }
   0x8   : > { %s30_s25 = sadd.s32 1, %s4360_s20  ;;  %s33_s26 = sadd.s32 1, %s4364_s21 }
   0x9   : > { %p31_p0 = scmp.ge.s32.totalorder %s30_s25, 2  ;;  %p101_p1 = scmp.ne.s32.totalorder %s4348_s17, %s4344_s16 }
   0xa   : > { %p102_p2 = scmp.eq.s32.totalorder %s3398_s23, 3  ;;  %p107_p5 = scmp.ne.s32.totalorder %s4344_s16, %s4340_s15 }
   0xb   : > { %s5267_s25 = smov (%p31_p0, %s30_s25), 0  ;;  %s5269_s26 = smov (!%p31_p0, %s33_s26), %s4364_s21 }
   0xc   : > { %s87_s27 = ssub.s32 %s4360_s20, %s5267_s25  ;;  %p4453_p3 = por %p102_p2, %p101_p1 }
   0xd   : > { %p35_p4 = scmp.ge.s32.totalorder %s5269_s26, 2  ;;  %p108_p6 = scmp.eq.s32.totalorder %s5249_s24, 3 }
   0xe   : > { %p3402_p7 = scmp.ge.s32.totalorder %s4368_s22, 1  ;;  %p197_p9 = scmp.lt.s32.totalorder %s4368_s22, 5 }
   0xf   : > { %s5271_s26 = smov (%p35_p4, %s5269_s26), 0  ;;  %p4464_p8 = por %p108_p6, %p107_p5 }
  0x10   : > { %s86_s30 = ssub.s32 %s4364_s21, %s5271_s26  ;;  %s91_s5 = sadd.s32 1, %s4348_s17 }
  0x11   : > { %s88_s6 = sor.u32 %s87_s27, %s86_s30  ;;  %p198_p10 = pnand %p3402_p7, %p197_p9 }
  0x12   : > { %p89_p11 = scmp.eq.s32.totalorder %s88_s6, 0  ;;  %v294_v0 = vld [vmem:[%s5245_s1] sm:$0x3] (!%p198_p10)  ;;  %vm360_vm0 = vcmask (!%p198_p10), 1041408   ;;  %p235_p12 = scmp.lt.s32.totalorder (!%p198_p10), %s4356_s19, 1  ;;  %vm335_vm1 = vcmask (!%p198_p10), 31744  }
  0x13   : > { %201 = sbr.rel (%p198_p10) target bundleno = 476 (0x1dc), region = 28  ;;  %p237_p13 = scmp.lt.s32.totalorder (!%p198_p10), %s4352_s18, 1  ;;  %4094 = vmatprep.subr.msk.bf16.mxu1 (!%p198_p10), %vm360_vm0, %v294_v0  ;;  %v362_v1 = vsel (!%p198_p10), %vm360_vm0, %v294_v0, 0  ;;  %v3520_v2 = vld [vmem:[%s5245_s1 + $0x8] sm:$0x3] (!%p198_p10)  ;;  %vm976_vm4 = vcmask (!%p198_p10), 1042432  }
  0x14   : > { %s4473_s7 = scalar_select %p89_p11, %s4348_s17, %s91_s5  }
  0x15   : > { %v3421_v3 = vld [vmem:[%s5245_s1 + $0x2] sm:$0x3] (!%p198_p10)  ;;  %3803 = vmatpush3.bf16.msra.mxu1 (!%p198_p10), %v362_v1  ;;  %4098 = vmatprep.subr.msk.bf16.mxu0 (!%p198_p10), %vm360_vm0, %v3520_v2  ;;  %v4491_v4 = vsel (!%p198_p10), %vm360_vm0, %v3520_v2, 0  ;;  %v3561_v5 = vld [vmem:[%s5245_s1 + $0xa] sm:$0x3] (!%p198_p10)  ;;  %vm977_vm5 = vcmask (!%p198_p10), 1046532  }
  0x16   : > { %3875 = vmatpush3.bf16.msra.mxu0 (!%p198_p10), %v4491_v4  ;;  %4095 = vmatprep.subr.msk.bf16.mxu1 (!%p198_p10), %vm360_vm0, %v3421_v3  ;;  %v4503_v6 = vld [vmem:[%s5245_s1 + $0xc] sm:$0x3] (!%p198_p10)  ;;  %v779_v7 = vsel (!%p198_p10), %vm360_vm0, %v3421_v3, 0  ;;  %v4507_v8 = vsel (!%p198_p10), %vm360_vm0, %v3561_v5, 0  ;;  %v3438_v9 = vld [vmem:[%s5245_s1 + $0x4] sm:$0x3] (!%p198_p10)  ;;  %vm4596_vm7 = vmor (!%p198_p10), %vm976_vm4, %vm977_vm5 }
  0x17   : > { %4100 = vmatprep.subr.msk.bf16.mxu0 (!%p198_p10), %vm360_vm0, %v3561_v5  ;;  %vm535_vm2 = vsmask.f32 (!%p198_p10), 3328  ;;  %vm536_vm3 = vsmask.f32 (!%p198_p10), 7440  ;;  %v4520_v10 = vld [vmem:[%s5245_s1 + $0xe] sm:$0x3] (!%p198_p10) }
  0x18   : > { %v4525_v11 = vld [vmem:[%s5245_s1 + $0x6] sm:$0x3] (!%p198_p10)  ;;  %v4530_v12 = vld [vmem:[%s5245_s1 + $0x10] sm:$0x3] (!%p198_p10)  ;;  %v4535_v14 = vsel (!%p198_p10), %vm360_vm0, %v4503_v6, 0  ;;  %v4539_v16 = vsel (!%p198_p10), %vm360_vm0, %v3438_v9, 0  ;;  %vm4568_vm6 = vmor (!%p198_p10), %vm535_vm2, %vm536_vm3 }
  0x19   : > { %v4545_v18 = vsel (!%p198_p10), %vm360_vm0, %v4520_v10, 0  ;;  %v4550_v19 = vsel (!%p198_p10), %vm360_vm0, %v4525_v11, 0  ;;  %v4554_v20 = vsel (!%p198_p10), %vm360_vm0, %v4530_v12, 0 }
  0x1a   : > { %s236_s14 = scalar_select %p235_p12, %s4356_s19, 1 }
  0x1b   : > { %s238_s27 = scalar_select %p237_p13, %s4352_s18, 1 }
  0x1c   : > { %s4105_s6 = smul.u32 60, %s236_s14  ;;  %s5086_s14 = sand.u32 1, %s4344_s16  }
  0x1d   : > { %s4104_s8 = smul.u32 30, %s238_s27  ;;  %s3403_s5 = sshll.u32 %s5086_s14, 7 }
  0x1f   : > { %s241_s9 = sadd.s32 %s4105_s6, %s4104_s8  ;;  %s3720_s6 = sshll.u32 %s4352_s18, 4 }
  0x20   : > { %s3404_s12 = sshll.u32 %s241_s9, 2  ;;  %s3712_s8 = sshll.u32 %s4356_s19, 5 }
  0x21   : > { %s4515_s27 = scalar_lea.vmem %s5244_s0, %s3404_s12  ;;  %s3223_s9 = sadd.s32 %s3720_s6, %s3712_s8 }
  0x22   : > { %v4189_v13 = vld [vmem:[%s4515_s27] sm:$0xff]   ;;  %v4190_v15 = vld [vmem:[%s4515_s27 + $0xc] sm:$0xff]   ;;  %v4191_v17 = vld [vmem:[%s4515_s27 + $0x18] sm:$0xff]   ;;  %s3713_s11 = sshll.u32 %s3223_s9, 7  ;;  %s4370_s8 = smov [#allocation3]  }
  0x23   : > { %3804 = vmatprep.mubr.msk.bf16.mxu1 %vm335_vm1, %v4189_v13  ;;  %v3496_v21 = vld [vmem:[%s4515_s27 + $0xc] sm:$0xf]  ;;  %v3497_v22 = vld [vmem:[%s4515_s27 + $0x10] sm:$0xf]  ;;  %v3498_v23 = vld [vmem:[%s4515_s27 + $0x14] sm:$0x1]  ;;  %s5113_s30 = scalar_lea.hbm %s5246_s2, %s3713_s11 }
  0x24   : > { %3805 = vmatmul.mubr.msk.bf16.vlgmr.msra.gmra.mrb[0].mxu1 %vm335_vm1, %v4190_v15  ;;  %v4192_v24 = vld [vmem:[%s4515_s27 + $0x24] sm:$0xff]   ;;  %v1489_v25 = vshrl.u32 %v3496_v21, 16  ;;  %v1492_v26 = vshll.u32 %v3496_v21, 16  ;;  %v1498_v27 = vshll.u32 %v3497_v22, 16  ;;  %v1502_v28 = vshrl.u32 %v3497_v22, 16  ;;  %v4193_v46 = vld [vmem:[%s4515_s27 + $0x30] sm:$0xff]  }
  0x25   : > { %3808 = vmatprep.mubr.msk.bf16.mxu1 %vm335_vm1, %v4191_v17  ;;  %3821 = vmatpush3.bf16.msra.mxu1 %v779_v7  ;;  %v3499_v29 = vld [vmem:[%s4515_s27 + $0x18] sm:$0xf]  ;;  %v1508_v30 = vshll.u32 %v3498_v23, 16  ;;  %v3500_v31 = vld [vmem:[%s4515_s27 + $0x1c] sm:$0xf]  ;;  %v4195_v17 = vld [vmem:[%s4515_s27 + $0x48] sm:$0xff]  }
  0x26   : > { %4096 = vmatprep.subr.msk.bf16.mxu1 %vm360_vm0, %v3438_v9  ;;  %v3501_v32 = vld [vmem:[%s4515_s27 + $0x20] sm:$0x1]  ;;  %v1513_v33 = vshrl.u32 %v3499_v29, 16  ;;  %v1491_v34 = vrot.slane %v1489_v25, 4  ;;  %v1494_v35 = vrot.slane %v1492_v26, 5  ;;  %v1500_v36 = vrot.slane %v1498_v27, 5 }
  0x27   : > { %v1504_v37 = vrot.slane %v1502_v28, 4  ;;  %v1510_v38 = vrot.slane %v1508_v30, 5  ;;  %v1516_v40 = vshll.u32 %v3499_v29, 16  ;;  %v1522_v41 = vshll.u32 %v3500_v31, 16  ;;  %v3502_v50 = vld [vmem:[%s4515_s27 + $0x24] sm:$0xf] }
  0x28   : > { %v1515_v39 = vrot.slane %v1513_v33, 4  ;;  %v1495_v42 = vor.u32 %v1494_v35, %v1491_v34  ;;  %v1526_v44 = vshrl.u32 %v3500_v31, 16  ;;  %v1532_v45 = vshll.u32 %v3501_v32, 16  ;;  %v3503_v55 = vld [vmem:[%s4515_s27 + $0x28] sm:$0xf]  ;;  %v4194_v0 = vld [vmem:[%s4515_s27 + $0x3c] sm:$0xff]  }
  0x29   : > { %v1505_v43 = vor.u32 %v1504_v37, %v1500_v36  ;;  %v1518_v48 = vrot.slane %v1516_v40, 5  ;;  %v1524_v49 = vrot.slane %v1522_v41, 5  ;;  %v3504_v57 = vld [vmem:[%s4515_s27 + $0x2c] sm:$0x1]  ;;  %v1537_v58 = vshrl.u32 %v3502_v50, 16  ;;  %s4218_s9 = sshll.u32 %s4370_s8, 4  ;;  %s4219_s9 = int_to_ptr.vmem [resolvable:$false] %s4218_s9 }
  0x2a   : > { %v1496_v51 = vrot.slane %v1495_v42, 4  ;;  %v1528_v53 = vrot.slane %v1526_v44, 4  ;;  %v1534_v54 = vrot.slane %v1532_v45, 5  ;;  %v1540_v59 = vshll.u32 %v3502_v50, 16  ;;  %v3505_v2 = vld [vmem:[%s4515_s27 + $0x30] sm:$0xf] }
  0x2b   : > { %v1506_v52 = vrot.slane %v1505_v43, 4  ;;  %v1519_v56 = vor.u32 %v1518_v48, %v1515_v39  ;;  %v1546_v60 = vshll.u32 %v3503_v55, 16  ;;  %v1550_v1 = vshrl.u32 %v3503_v55, 16  ;;  %v3506_v3 = vld [vmem:[%s4515_s27 + $0x34] sm:$0xf]  ;;  %s4220_s24 = scalar_lea.vmem %s4219_s9, 4096 }
  0x2c   : > { %3809 = vmatmul.mubr.msk.bf16.gmra.mrb[4].mxu1 %vm335_vm1, %v4192_v24  ;;  %v1501_v61 = vsel %vm4568_vm6, %v1496_v51, %v1500_v36  ;;  %v1529_v63 = vor.u32 %v1528_v53, %v1524_v49  ;;  %v1539_v9 = vrot.slane %v1537_v58, 4  ;;  %v1542_v13 = vrot.slane %v1540_v59, 5  ;;  %v3507_v15 = vld [vmem:[%s4515_s27 + $0x38] sm:$0x1]  ;;  %v3537_v33 = vld [vmem:[%s4515_s27 + $0xc] sm:$0xe] }
  0x2d   : > { %3812 = vmatprep.mubr.msk.bf16.mxu1 %vm335_vm1, %v4193_v46  ;;  %v1511_v62 = vsel %vm4568_vm6, %v1506_v52, %v1510_v38  ;;  %v1520_v7 = vrot.slane %v1519_v56, 4  ;;  %v1548_v22 = vrot.slane %v1546_v60, 5  ;;  %v1552_v23 = vrot.slane %v1550_v1, 4  ;;  %v3538_v38 = vld [vmem:[%s4515_s27 + $0x10] sm:$0xf] }
  0x2e   : > { %v3521_v5 = vcombine.low %v1501_v61, %v1511_v62  ;;  %v1530_v21 = vrot.slane %v1529_v63, 4  ;;  %v1556_v24 = vshll.u32 %v3504_v57, 16  ;;  %v1543_v26 = vor.u32 %v1542_v13, %v1539_v9  ;;  %v3539_v44 = vld [vmem:[%s4515_s27 + $0x14] sm:$0x1]  ;;  %v3540_v50 = vld [vmem:[%s4515_s27 + $0x18] sm:$0xe] }
  0x2f   : > { %v1525_v25 = vsel %vm4568_vm6, %v1520_v7, %v1524_v49  ;;  %v1561_v27 = vshrl.u32 %v3505_v2, 16  ;;  %v1564_v28 = vshll.u32 %v3505_v2, 16  ;;  %v1553_v30 = vor.u32 %v1552_v23, %v1548_v22  ;;  %v3541_v51 = vld [vmem:[%s4515_s27 + $0x1c] sm:$0xf]  ;;  %v3542_v56 = vld [vmem:[%s4515_s27 + $0x20] sm:$0x1] }
  0x30   : > { %3876 = vmatprep.mubr.msk.bf16.mxu0 %vm335_vm1, %v3521_v5  ;;  %v1535_v29 = vsel %vm4568_vm6, %v1530_v21, %v1534_v54  ;;  %v1558_v31 = vrot.slane %v1556_v24, 5  ;;  %v1570_v32 = vshll.u32 %v3506_v3, 16  ;;  %v1544_v35 = vrot.slane %v1543_v26, 4  ;;  %v4196_v62 = vld [vmem:[%s4515_s27 + $0x54] sm:$0xff]   ;;  %v494_v2 = vld [vmem:[%s4515_s27 + $0x4] sm:$0xf] }
  0x31   : > { %v3522_v34 = vcombine.low %v1525_v25, %v1535_v29  ;;  %v1563_v36 = vrot.slane %v1561_v27, 4  ;;  %v1566_v37 = vrot.slane %v1564_v28, 5  ;;  %v1554_v39 = vrot.slane %v1553_v30, 4  ;;  %v495_v7 = vld [vmem:[%s4515_s27 + $0x8] sm:$0x1] }
  0x32   : > { %v1572_v40 = vrot.slane %v1570_v32, 5  ;;  %v1574_v41 = vshrl.u32 %v3506_v3, 16  ;;  %v1580_v42 = vshll.u32 %v3507_v15, 16  ;;  %v1549_v45 = vsel %vm4568_vm6, %v1544_v35, %v1548_v22  ;;  %v496_v13 = vld [vmem:[%s4515_s27 + $0xc] sm:$0xf] }
  0x33   : > { %3877 = vmatmul.mubr.msk.bf16.vlgmr.msra.gmra.mrb[0].mxu0 %vm335_vm1, %v3522_v34  ;;  %v1567_v46 = vor.u32 %v1566_v37, %v1563_v36  ;;  %v3562_v48 = vrot.slane %v3537_v33, 9  ;;  %v1928_v49 = vrot.slane %v3538_v38, 5  ;;  %v1559_v52 = vsel %vm4568_vm6, %v1554_v39, %v1558_v31  ;;  %v497_v30 = vld [vmem:[%s4515_s27 + $0x10] sm:$0xf]  ;;  %v498_v31 = vld [vmem:[%s4515_s27 + $0x14] sm:$0x1] }
  0x34   : > { %3813 = vmatmul.mubr.msk.bf16.gmra.mrb[8].mxu1 %vm335_vm1, %v4194_v0  ;;  %3893 = vmatpush3.bf16.msra.mxu0 %v4507_v8  ;;  %v1576_v53 = vrot.slane %v1574_v41, 4  ;;  %v1582_v54 = vrot.slane %v1580_v42, 5  ;;  %v1931_v55 = vrot.slane %v3539_v44, 5  ;;  %v3523_v57 = vcombine.low %v1549_v45, %v1559_v52  ;;  %v493_v8 = vld [vmem:[%s4515_s27] sm:$0xf] }
  0x35   : > { %3816 = vmatprep.mubr.msk.bf16.mxu1 %vm335_vm1, %v4195_v17  ;;  %v1568_v58 = vrot.slane %v1567_v46, 4  ;;  %v1929_v59 = vsel %vm4596_vm7, %v3562_v48, %v1928_v49  ;;  %v1930_v60 = vrot.slane %v1928_v49, 4  ;;  %4101 = vmatprep.subr.msk.bf16.mxu0 %vm360_vm0, %v4503_v6  ;;  %v3563_v63 = vrot.slane %v3540_v50, 9  ;;  %v3543_v37 = vld [vmem:[%s4515_s27 + $0x24] sm:$0xe] }
  0x36   : > { %v1577_v61 = vor.u32 %v1576_v53, %v1572_v40  ;;  %v1935_v0 = vrot.slane %v3541_v51, 5  ;;  %v1938_v1 = vrot.slane %v3542_v56, 5  ;;  %3880 = vmatprep.mubr.msk.bf16.mxu0 %vm335_vm1, %v3523_v57  ;;  %v539_v9 = vshrl.u32 %v493_v8, 16  ;;  %v3544_v38 = vld [vmem:[%s4515_s27 + $0x28] sm:$0xf] }
  0x37   : > { %v1573_v3 = vsel %vm4568_vm6, %v1568_v58, %v1572_v40  ;;  %v1932_v5 = vsel %vm4596_vm7, %v1930_v60, %v1931_v55  ;;  %v542_v6 = vshll.u32 %v493_v8, 16  ;;  %v548_v25 = vshll.u32 %v494_v2, 16  ;;  %v3545_v44 = vld [vmem:[%s4515_s27 + $0x2c] sm:$0x1]  ;;  %v3546_v45 = vld [vmem:[%s4515_s27 + $0x30] sm:$0xe] }
  0x38   : > { %v1578_v15 = vrot.slane %v1577_v61, 4  ;;  %v3570_v17 = vcombine.low %v1929_v59, %v1932_v5  ;;  %v4627_v21 = vsel %vm4596_vm7, %v3563_v63, %v1935_v0  ;;  %v1937_v22 = vrot.slane %v1935_v0, 4  ;;  %v3547_v51 = vld [vmem:[%s4515_s27 + $0x34] sm:$0xf]  ;;  %v3548_v56 = vld [vmem:[%s4515_s27 + $0x38] sm:$0x1] }
  0x39   : > { %v541_v23 = vrot.slane %v539_v9, 4  ;;  %v544_v24 = vrot.slane %v542_v6, 5  ;;  %v552_v26 = vshrl.u32 %v494_v2, 16  ;;  %v558_v29 = vshll.u32 %v495_v7, 16  ;;  %v499_v8 = vld [vmem:[%s4515_s27 + $0x18] sm:$0xf] }
  0x3a   : > { %v1583_v27 = vsel %vm4568_vm6, %v1578_v15, %v1582_v54  ;;  %v1939_v28 = vsel %vm4596_vm7, %v1937_v22, %v1938_v1  ;;  %v563_v32 = vshrl.u32 %v496_v13, 16  ;;  %v550_v36 = vrot.slane %v548_v25, 5  ;;  %v502_v25 = vld [vmem:[%s4515_s27 + $0x24] sm:$0xf] }
  0x3b   : > { %v3524_v33 = vcombine.low %v1573_v3, %v1583_v27  ;;  %v3571_v34 = vcombine.low %v4627_v21, %v1939_v28  ;;  %v545_v35 = vor.u32 %v544_v24, %v541_v23  ;;  %v554_v39 = vrot.slane %v552_v26, 4  ;;  %v501_v24 = vld [vmem:[%s4515_s27 + $0x20] sm:$0x1] }
  0x3c   : > { %3817 = vmatmul.mubr.msk.bf16.gmra.mrb[12].mxu1 %vm335_vm1, %v4196_v62  ;;  %v560_v40 = vrot.slane %v558_v29, 5  ;;  %v565_v41 = vrot.slane %v563_v32, 4  ;;  %v566_v42 = vshll.u32 %v496_v13, 16  ;;  %v572_v48 = vshll.u32 %v497_v30, 16  ;;  %v500_v13 = vld [vmem:[%s4515_s27 + $0x1c] sm:$0xf] }
  0x3d   : > { %3881 = vmatmul.mubr.msk.bf16.gmra.mrb[4].mxu0 %vm335_vm1, %v3524_v33  ;;  %v546_v46 = vrot.slane %v545_v35, 4  ;;  %v576_v49 = vshrl.u32 %v497_v30, 16  ;;  %v582_v50 = vshll.u32 %v498_v31, 16  ;;  %v555_v52 = vor.u32 %v554_v39, %v550_v36  ;;  %v503_v35 = vld [vmem:[%s4515_s27 + $0x28] sm:$0xf] }
  0x3e   : > { %3894 = vmatprep.mubr.msk.bf16.mxu0 %vm335_vm1, %v3570_v17  ;;  %v568_v53 = vrot.slane %v566_v42, 5  ;;  %v3564_v54 = vrot.slane %v3543_v37, 9  ;;  %v1942_v55 = vrot.slane %v3544_v38, 5  ;;  %v574_v58 = vrot.slane %v572_v48, 5 }
  0x3f   : > { %v551_v57 = vsel %vm4568_vm6, %v546_v46, %v550_v36  ;;  %v578_v59 = vrot.slane %v576_v49, 4  ;;  %v584_v60 = vrot.slane %v582_v50, 5  ;;  %v556_v61 = vrot.slane %v555_v52, 4  ;;  %v3550_v46 = vld [vmem:[%s4515_s27 + $0x40] sm:$0xf] }
  0x40   : > { %v569_v62 = vor.u32 %v568_v53, %v565_v41  ;;  %v1943_v63 = vsel %vm4596_vm7, %v3564_v54, %v1942_v55  ;;  %v1944_v0 = vrot.slane %v1942_v55, 4  ;;  %v1945_v2 = vrot.slane %v3545_v44, 5  ;;  %v3551_v55 = vld [vmem:[%s4515_s27 + $0x44] sm:$0x1] }
  0x41   : > { %v579_v1 = vor.u32 %v578_v59, %v574_v58  ;;  %v3565_v3 = vrot.slane %v3546_v45, 9  ;;  %v1949_v5 = vrot.slane %v3547_v51, 5  ;;  %v561_v7 = vsel %vm4568_vm6, %v556_v61, %v560_v40  ;;  %v3549_v40 = vld [vmem:[%s4515_s27 + $0x3c] sm:$0xe]  ;;  %v3552_v59 = vld [vmem:[%s4515_s27 + $0x48] sm:$0xe] }
  0x42   : > { %v570_v9 = vrot.slane %v569_v62, 4  ;;  %v1952_v6 = vrot.slane %v3548_v56, 5  ;;  %v587_v15 = vshrl.u32 %v499_v8, 16  ;;  %v3422_v17 = vcombine.low %v551_v57, %v561_v7 }
  0x43   : > { %v580_v21 = vrot.slane %v579_v1, 4  ;;  %v1946_v22 = vsel %vm4596_vm7, %v1944_v0, %v1945_v2  ;;  %v1950_v23 = vsel %vm4596_vm7, %v3565_v3, %v1949_v5  ;;  %v1951_v28 = vrot.slane %v1949_v5, 4  ;;  %v3554_v3 = vld [vmem:[%s4515_s27 + $0x50] sm:$0x1] }
  0x44   : > { %v575_v26 = vsel %vm4568_vm6, %v570_v9, %v574_v58  ;;  %v3572_v27 = vcombine.low %v1943_v63, %v1946_v22  ;;  %v589_v29 = vrot.slane %v587_v15, 4  ;;  %3822 = vmatprep.mubr.msk.bf16.mxu1 %vm335_vm1, %v3422_v17  ;;  %v590_v31 = vshll.u32 %v499_v8, 16  ;;  %v3553_v63 = vld [vmem:[%s4515_s27 + $0x4c] sm:$0xf]  ;;  %v505_v5 = vld [vmem:[%s4515_s27 + $0x30] sm:$0xf] }
  0x45   : > { %3895 = vmatmul.mubr.msk.bf16.vlgmr.msra.gmra.mrb[0].mxu0 %vm335_vm1, %v3571_v34  ;;  %v585_v30 = vsel %vm4568_vm6, %v580_v21, %v584_v60  ;;  %v596_v32 = vshll.u32 %v500_v13, 16  ;;  %v600_v33 = vshrl.u32 %v500_v13, 16  ;;  %v1953_v37 = vsel %vm4596_vm7, %v1951_v28, %v1952_v6  ;;  %v504_v34 = vld [vmem:[%s4515_s27 + $0x2c] sm:$0x1]  ;;  %v506_v22 = vld [vmem:[%s4515_s27 + $0x34] sm:$0xf] }
  0x46   : > { %3911 = vmatpush3.bf16.msra.mxu0 %v4535_v14  ;;  %v3423_v36 = vcombine.low %v575_v26, %v585_v30  ;;  %3898 = vmatprep.mubr.msk.bf16.mxu0 %vm335_vm1, %v3572_v27  ;;  %v606_v38 = vshll.u32 %v501_v24, 16  ;;  %v611_v39 = vshrl.u32 %v502_v25, 16  ;;  %v3573_v41 = vcombine.low %v1950_v23, %v1953_v37  ;;  %v507_v23 = vld [vmem:[%s4515_s27 + $0x38] sm:$0x1]  ;;  %v508_v28 = vld [vmem:[%s4515_s27 + $0x3c] sm:$0xf] }
  0x47   : > { %v592_v42 = vrot.slane %v590_v31, 5  ;;  %v598_v44 = vrot.slane %v596_v32, 5  ;;  %v602_v45 = vrot.slane %v600_v33, 4  ;;  %4102 = vmatprep.subr.msk.bf16.mxu0 %vm360_vm0, %v4520_v10  ;;  %v614_v49 = vshll.u32 %v502_v25, 16  ;;  %v509_v33 = vld [vmem:[%s4515_s27 + $0x40] sm:$0xf] }
  0x48   : > { %3823 = vmatmul.mubr.msk.bf16.vlgmr.msra.gmra.mrb[0].mxu1 %vm335_vm1, %v3423_v36  ;;  %v608_v14 = vrot.slane %v606_v38, 5  ;;  %v613_v48 = vrot.slane %v611_v39, 4  ;;  %v620_v50 = vshll.u32 %v503_v35, 16  ;;  %v624_v53 = vshrl.u32 %v503_v35, 16  ;;  %v510_v35 = vld [vmem:[%s4515_s27 + $0x44] sm:$0x1] }
  0x49   : > { %v593_v51 = vor.u32 %v592_v42, %v589_v29  ;;  %v603_v52 = vor.u32 %v602_v45, %v598_v44  ;;  %v630_v54 = vshll.u32 %v504_v34, 16  ;;  %3839 = vmatpush3.bf16.msra.mxu1 %v4539_v16  ;;  %v616_v56 = vrot.slane %v614_v49, 5  ;;  %v3555_v39 = vld [vmem:[%s4515_s27 + $0x54] sm:$0xe]  ;;  %v3556_v45 = vld [vmem:[%s4515_s27 + $0x58] sm:$0xf] }
  0x4a   : > { %v622_v57 = vrot.slane %v620_v50, 5  ;;  %v3566_v10 = vrot.slane %v3549_v40, 9  ;;  %v1956_v58 = vrot.slane %v3550_v46, 5  ;;  %4097 = vmatprep.subr.msk.bf16.mxu1 %vm360_vm0, %v4525_v11  ;;  %v626_v61 = vrot.slane %v624_v53, 4 }
  0x4b   : > { %v594_v60 = vrot.slane %v593_v51, 4  ;;  %v604_v8 = vrot.slane %v603_v52, 4  ;;  %v632_v62 = vrot.slane %v630_v54, 5  ;;  %v617_v0 = vor.u32 %v616_v56, %v613_v48  ;;  %v3557_v54 = vld [vmem:[%s4515_s27 + $0x5c] sm:$0x1] }
  0x4c   : > { %v1957_v16 = vsel %vm4596_vm7, %v3566_v10, %v1956_v58  ;;  %v1958_v1 = vrot.slane %v1956_v58, 4  ;;  %v1959_v2 = vrot.slane %v3551_v55, 5  ;;  %v627_v9 = vor.u32 %v626_v61, %v622_v57  ;;  %v3558_v58 = vld [vmem:[%s4515_s27 + $0x60] sm:$0xe] }
  0x4d   : > { %3899 = vmatmul.mubr.msk.bf16.gmra.mrb[4].mxu0 %vm335_vm1, %v3573_v41  ;;  %v599_v11 = vsel %vm4568_vm6, %v594_v60, %v598_v44  ;;  %v609_v7 = vsel %vm4568_vm6, %v604_v8, %v608_v14  ;;  %v3567_v6 = vrot.slane %v3552_v59, 9  ;;  %v618_v15 = vrot.slane %v617_v0, 4 }
  0x4e   : > { %v3424_v13 = vcombine.low %v599_v11, %v609_v7  ;;  %v1960_v17 = vsel %vm4596_vm7, %v1958_v1, %v1959_v2  ;;  %v1963_v21 = vrot.slane %v3553_v63, 5  ;;  %v628_v24 = vrot.slane %v627_v9, 4  ;;  %v3560_v2 = vld [vmem:[%s4515_s27 + $0x68] sm:$0x1] }
  0x4f   : > { %v3574_v25 = vcombine.low %v1957_v16, %v1960_v17  ;;  %v1966_v26 = vrot.slane %v3554_v3, 5  ;;  %v635_v27 = vshrl.u32 %v505_v5, 16  ;;  %v623_v29 = vsel %vm4568_vm6, %v618_v15, %v622_v57  ;;  %v511_v9 = vld [vmem:[%s4515_s27 + $0x48] sm:$0xf] }
  0x50   : > { %3826 = vmatprep.mubr.msk.bf16.mxu1 %vm335_vm1, %v3424_v13  ;;  %v1964_v30 = vsel %vm4596_vm7, %v3567_v6, %v1963_v21  ;;  %v1965_v31 = vrot.slane %v1963_v21, 4  ;;  %v638_v32 = vshll.u32 %v505_v5, 16  ;;  %v633_v36 = vsel %vm4568_vm6, %v628_v24, %v632_v62  ;;  %v3559_v62 = vld [vmem:[%s4515_s27 + $0x64] sm:$0xf]  ;;  %v512_v6 = vld [vmem:[%s4515_s27 + $0x4c] sm:$0xf] }
  0x51   : > { %3902 = vmatprep.mubr.msk.bf16.mxu0 %vm335_vm1, %v3574_v25  ;;  %v637_v37 = vrot.slane %v635_v27, 4  ;;  %v644_v38 = vshll.u32 %v506_v22, 16  ;;  %v648_v34 = vshrl.u32 %v506_v22, 16  ;;  %v3425_v40 = vcombine.low %v623_v29, %v633_v36  ;;  %v513_v22 = vld [vmem:[%s4515_s27 + $0x50] sm:$0x1] }
  0x52   : > { %v1967_v41 = vsel %vm4596_vm7, %v1965_v31, %v1966_v26  ;;  %v640_v42 = vrot.slane %v638_v32, 5  ;;  %v654_v44 = vshll.u32 %v507_v23, 16  ;;  %v659_v49 = vshrl.u32 %v508_v28, 16  ;;  %v514_v36 = vld [vmem:[%s4515_s27 + $0x54] sm:$0xf] }
  0x53   : > { %v3575_v46 = vcombine.low %v1964_v30, %v1967_v41  ;;  %v646_v14 = vrot.slane %v644_v38, 5  ;;  %v650_v48 = vrot.slane %v648_v34, 4  ;;  %3827 = vmatmul.mubr.msk.bf16.gmra.mrb[4].mxu1 %vm335_vm1, %v3425_v40  ;;  %v662_v52 = vshll.u32 %v508_v28, 16  ;;  %v516_v41 = vld [vmem:[%s4515_s27 + $0x5c] sm:$0x1] }
  0x54   : > { %v641_v50 = vor.u32 %v640_v42, %v637_v37  ;;  %v656_v51 = vrot.slane %v654_v44, 5  ;;  %v668_v53 = vshll.u32 %v509_v33, 16  ;;  %v661_v56 = vrot.slane %v659_v49, 4  ;;  %v515_v37 = vld [vmem:[%s4515_s27 + $0x58] sm:$0xf] }
  0x55   : > { %3903 = vmatmul.mubr.msk.bf16.gmra.mrb[8].mxu0 %vm335_vm1, %v3575_v46  ;;  %v651_v55 = vor.u32 %v650_v48, %v646_v14  ;;  %v672_v57 = vshrl.u32 %v509_v33, 16  ;;  %v678_v10 = vshll.u32 %v510_v35, 16  ;;  %v664_v60 = vrot.slane %v662_v52, 5  ;;  %v4197_v42 = vld [vmem:[%s4515_s27 + $0x18] sm:$0xff]   ;;  %v910_v48 = vld [vmem:[%s4515_s27] sm:$0xe] }
  0x56   : > { %v642_v59 = vrot.slane %v641_v50, 4  ;;  %v670_v8 = vrot.slane %v668_v53, 5  ;;  %v3568_v61 = vrot.slane %v3555_v39, 9  ;;  %v1970_v1 = vrot.slane %v3556_v45, 5  ;;  %v911_v49 = vld [vmem:[%s4515_s27 + $0x4] sm:$0xf] }
  0x57   : > { %v652_v63 = vrot.slane %v651_v55, 4  ;;  %v674_v0 = vrot.slane %v672_v57, 4  ;;  %v680_v16 = vrot.slane %v678_v10, 5  ;;  %v665_v5 = vor.u32 %v664_v60, %v661_v56  ;;  %v913_v55 = vld [vmem:[%s4515_s27 + $0xc] sm:$0xe] }
  0x58   : > { %v647_v3 = vsel %vm4568_vm6, %v642_v59, %v646_v14  ;;  %v1973_v11 = vrot.slane %v3557_v54, 5  ;;  %v3569_v7 = vrot.slane %v3558_v58, 9  ;;  %v1971_v17 = vsel %vm4596_vm7, %v3568_v61, %v1970_v1  ;;  %v912_v54 = vld [vmem:[%s4515_s27 + $0x8] sm:$0x1]  ;;  %v914_v59 = vld [vmem:[%s4515_s27 + $0x10] sm:$0xf] }
  0x59   : > { %v657_v13 = vsel %vm4568_vm6, %v652_v63, %v656_v51  ;;  %v675_v15 = vor.u32 %v674_v0, %v670_v8  ;;  %v1972_v21 = vrot.slane %v1970_v1, 4  ;;  %v666_v24 = vrot.slane %v665_v5, 4  ;;  %v915_v63 = vld [vmem:[%s4515_s27 + $0x14] sm:$0x1]  ;;  %v916_v0 = vld [vmem:[%s4515_s27 + $0x18] sm:$0xe] }
  0x5a   : > { %v3426_v23 = vcombine.low %v647_v3, %v657_v13  ;;  %v1977_v25 = vrot.slane %v3559_v62, 5  ;;  %v1980_v26 = vrot.slane %v3560_v2, 5  ;;  %v683_v29 = vshrl.u32 %v511_v9, 16 }
  0x5b   : > { %v676_v27 = vrot.slane %v675_v15, 4  ;;  %v1974_v28 = vsel %vm4596_vm7, %v1972_v21, %v1973_v11  ;;  %v686_v30 = vshll.u32 %v511_v9, 16  ;;  %v671_v31 = vsel %vm4568_vm6, %v666_v24, %v670_v8 }
  0x5c   : > { %3830 = vmatprep.mubr.msk.bf16.mxu1 %vm335_vm1, %v3426_v23  ;;  %v3576_v32 = vcombine.low %v1971_v17, %v1974_v28  ;;  %v1978_v33 = vsel %vm4596_vm7, %v3569_v7, %v1977_v25  ;;  %v1979_v35 = vrot.slane %v1977_v25, 4  ;;  %v685_v34 = vrot.slane %v683_v29, 4  ;;  %v4198_v17 = vld [vmem:[%s4515_s27 + $0x24] sm:$0xff]   ;;  %v918_v23 = vld [vmem:[%s4515_s27 + $0x20] sm:$0x1] }
  0x5d   : > { %v681_v38 = vsel %vm4568_vm6, %v676_v27, %v680_v16  ;;  %v688_v39 = vrot.slane %v686_v30, 5  ;;  %v692_v40 = vshll.u32 %v512_v6, 16  ;;  %v696_v46 = vshrl.u32 %v512_v6, 16  ;;  %v917_v6 = vld [vmem:[%s4515_s27 + $0x1c] sm:$0xf] }
  0x5e   : > { %v3427_v44 = vcombine.low %v671_v31, %v681_v38  ;;  %3906 = vmatprep.mubr.msk.bf16.mxu0 %vm335_vm1, %v3576_v32  ;;  %v1981_v45 = vsel %vm4596_vm7, %v1979_v35, %v1980_v26  ;;  %v702_v14 = vshll.u32 %v513_v22, 16  ;;  %v707_v53 = vshrl.u32 %v514_v36, 16  ;;  %v919_v28 = vld [vmem:[%s4515_s27 + $0x24] sm:$0xe]  ;;  %v920_v29 = vld [vmem:[%s4515_s27 + $0x28] sm:$0xf] }
  0x5f   : > { %v3577_v50 = vcombine.low %v1978_v33, %v1981_v45  ;;  %v689_v51 = vor.u32 %v688_v39, %v685_v34  ;;  %v694_v52 = vrot.slane %v692_v40, 5  ;;  %v698_v56 = vrot.slane %v696_v46, 4  ;;  %v4199_v33 = vld [vmem:[%s4515_s27 + $0x30] sm:$0xff]  }
  0x60   : > { %3831 = vmatmul.mubr.msk.bf16.gmra.mrb[8].mxu1 %vm335_vm1, %v3427_v44  ;;  %v704_v57 = vrot.slane %v702_v14, 5  ;;  %v710_v10 = vshll.u32 %v514_v36, 16  ;;  %v716_v58 = vshll.u32 %v515_v37, 16  ;;  %v709_v8 = vrot.slane %v707_v53, 4  ;;  %v921_v36 = vld [vmem:[%s4515_s27 + $0x2c] sm:$0x1] }
  0x61   : > { %3907 = vmatmul.mubr.msk.bf16.gmra.mrb[12].mxu0 %vm335_vm1, %v3577_v50  ;;  %v690_v60 = vrot.slane %v689_v51, 4  ;;  %v720_v61 = vshrl.u32 %v515_v37, 16  ;;  %v726_v62 = vshll.u32 %v516_v41, 16  ;;  %v699_v16 = vor.u32 %v698_v56, %v694_v52  ;;  %v922_v40 = vld [vmem:[%s4515_s27 + $0x30] sm:$0xe] }
  0x62   : > { %v712_v1 = vrot.slane %v710_v10, 5  ;;  %v718_v2 = vrot.slane %v716_v58, 5  ;;  %3912 = vmatprep.mubr.msk.bf16.mxu0 %vm335_vm1, %v4197_v42  ;;  %v3439_v3 = vrot.slane %v910_v48, 9  ;;  %v981_v9 = vrot.slane %v911_v49, 5  ;;  %v923_v41 = vld [vmem:[%s4515_s27 + $0x34] sm:$0xf] }
  0x63   : > { %v695_v5 = vsel %vm4568_vm6, %v690_v60, %v694_v52  ;;  %v722_v11 = vrot.slane %v720_v61, 4  ;;  %v728_v7 = vrot.slane %v726_v62, 5  ;;  %v700_v13 = vrot.slane %v699_v16, 4  ;;  %v924_v42 = vld [vmem:[%s4515_s27 + $0x38] sm:$0x1] }
  0x64   : > { %v713_v15 = vor.u32 %v712_v1, %v709_v8  ;;  %v984_v21 = vrot.slane %v912_v54, 5  ;;  %v3440_v22 = vrot.slane %v913_v55, 9  ;;  %v982_v25 = vsel %vm4596_vm7, %v3439_v3, %v981_v9  ;;  %v925_v48 = vld [vmem:[%s4515_s27 + $0x3c] sm:$0xe]  ;;  %v927_v10 = vld [vmem:[%s4515_s27 + $0x44] sm:$0x1] }
  0x65   : > { %v723_v24 = vor.u32 %v722_v11, %v718_v2  ;;  %v983_v26 = vrot.slane %v981_v9, 4  ;;  %v988_v27 = vrot.slane %v914_v59, 5  ;;  %v705_v30 = vsel %vm4568_vm6, %v700_v13, %v704_v57  ;;  %v926_v57 = vld [vmem:[%s4515_s27 + $0x40] sm:$0xf]  ;;  %v929_v61 = vld [vmem:[%s4515_s27 + $0x4c] sm:$0xf] }
  0x66   : > { %v714_v31 = vrot.slane %v713_v15, 4  ;;  %v991_v32 = vrot.slane %v915_v63, 5  ;;  %v3441_v35 = vrot.slane %v916_v0, 9  ;;  %v3428_v37 = vcombine.low %v695_v5, %v705_v30  ;;  %v4200_v59 = vld [vmem:[%s4515_s27 + $0x3c] sm:$0xff]   ;;  %v4201_v63 = vld [vmem:[%s4515_s27 + $0x48] sm:$0xff]  }
  0x67   : > { %v724_v38 = vrot.slane %v723_v24, 4  ;;  %v985_v34 = vsel %vm4596_vm7, %v983_v26, %v984_v21  ;;  %v4768_v39 = vsel %vm4596_vm7, %v3440_v22, %v988_v27  ;;  %v990_v46 = vrot.slane %v988_v27, 4  ;;  %v932_v9 = vld [vmem:[%s4515_s27 + $0x58] sm:$0xf]  ;;  %v933_v21 = vld [vmem:[%s4515_s27 + $0x5c] sm:$0x1] }
  0x68   : > { %v719_v44 = vsel %vm4568_vm6, %v714_v31, %v718_v2  ;;  %v3447_v45 = vcombine.low %v982_v25, %v985_v34  ;;  %v995_v14 = vrot.slane %v917_v6, 5  ;;  %3834 = vmatprep.mubr.msk.bf16.mxu1 %vm335_vm1, %v3428_v37  ;;  %v998_v50 = vrot.slane %v918_v23, 5  ;;  %v930_v2 = vld [vmem:[%s4515_s27 + $0x50] sm:$0x1]  ;;  %v3619_v22 = vld [vmem:[%s4515_s27 + $0x18] sm:$0xf] }
  0x69   : > { %v729_v49 = vsel %vm4568_vm6, %v724_v38, %v728_v7  ;;  %3913 = vmatmul.mubr.msk.bf16.vlgmr.msra.gmra.mrb[0].mxu0 %vm335_vm1, %v4198_v17  ;;  %v3442_v51 = vrot.slane %v919_v28, 9  ;;  %v1002_v52 = vrot.slane %v920_v29, 5  ;;  %v992_v54 = vsel %vm4596_vm7, %v990_v46, %v991_v32  ;;  %v931_v7 = vld [vmem:[%s4515_s27 + $0x54] sm:$0xe]  ;;  %v3620_v27 = vld [vmem:[%s4515_s27 + $0x1c] sm:$0xf] }
  0x6a   : > { %v3429_v53 = vcombine.low %v719_v44, %v729_v49  ;;  %3929 = vmatpush3.bf16.msra.mxu0 %v4545_v18  ;;  %3916 = vmatprep.mubr.msk.bf16.mxu0 %vm335_vm1, %v4199_v33  ;;  %v4786_v55 = vsel %vm4596_vm7, %v3441_v35, %v995_v14  ;;  %v997_v56 = vrot.slane %v995_v14, 4  ;;  %v3448_v58 = vcombine.low %v4768_v39, %v992_v54  ;;  %v928_v18 = vld [vmem:[%s4515_s27 + $0x48] sm:$0xe]  ;;  %v3621_v32 = vld [vmem:[%s4515_s27 + $0x20] sm:$0x1] }
  0x6b   : > { %v1004_v60 = vrot.slane %v1002_v52, 4  ;;  %v1005_v8 = vrot.slane %v921_v36, 5  ;;  %4103 = vmatprep.subr.msk.bf16.mxu0 %vm360_vm0, %v4530_v12  ;;  %v3443_v0 = vrot.slane %v922_v40, 9  ;;  %v1009_v16 = vrot.slane %v923_v41, 5  ;;  %v3622_v38 = vld [vmem:[%s4515_s27 + $0x24] sm:$0xf] }
  0x6c   : > { %3835 = vmatmul.mubr.msk.bf16.gmra.mrb[12].mxu1 %vm335_vm1, %v3429_v53  ;;  %v999_v62 = vsel %vm4596_vm7, %v997_v56, %v998_v50  ;;  %v1012_v1 = vrot.slane %v924_v42, 5  ;;  %v4805_v12 = vsel %vm4596_vm7, %v3442_v51, %v1002_v52  ;;  %v3444_v5 = vrot.slane %v925_v48, 9  ;;  %v3623_v51 = vld [vmem:[%s4515_s27 + $0x28] sm:$0xf]  ;;  %v3624_v52 = vld [vmem:[%s4515_s27 + $0x2c] sm:$0x1] }
  0x6d   : > { %3840 = vmatprep.mubr.msk.bf16.mxu1 %vm335_vm1, %v3447_v45  ;;  %v3449_v3 = vcombine.low %v4786_v55, %v999_v62  ;;  %v1016_v11 = vrot.slane %v926_v57, 5  ;;  %v4811_v6 = vsel %vm4596_vm7, %v1004_v60, %v1005_v8  ;;  %v4815_v13 = vsel %vm4596_vm7, %v3443_v0, %v1009_v16  ;;  %v4202_v53 = vld [vmem:[%s4515_s27 + $0x54] sm:$0xff]  }
  0x6e   : > { %v1011_v15 = vrot.slane %v1009_v16, 4  ;;  %v1019_v17 = vrot.slane %v927_v10, 5  ;;  %v3445_v25 = vrot.slane %v928_v18, 9  ;;  %v1023_v26 = vrot.slane %v929_v61, 5  ;;  %v3625_v10 = vld [vmem:[%s4515_s27 + $0x30] sm:$0xf] }
  0x6f   : > { %v4821_v23 = vsel %vm4596_vm7, %v3444_v5, %v1016_v11  ;;  %v1018_v24 = vrot.slane %v1016_v11, 4  ;;  %v1026_v29 = vrot.slane %v930_v2, 5  ;;  %v3446_v30 = vrot.slane %v931_v7, 9  ;;  %v3626_v16 = vld [vmem:[%s4515_s27 + $0x34] sm:$0xf] }
  0x70   : > { %v4826_v28 = vsel %vm4596_vm7, %v1011_v15, %v1012_v1  ;;  %v1030_v31 = vrot.slane %v932_v9, 5  ;;  %v3450_v33 = vcombine.low %v4805_v12, %v4811_v6  ;;  %v4838_v36 = vsel %vm4596_vm7, %v3445_v25, %v1023_v26  ;;  %v3627_v12 = vld [vmem:[%s4515_s27 + $0x38] sm:$0x1] }
  0x71   : > { %3917 = vmatmul.mubr.msk.bf16.gmra.mrb[4].mxu0 %vm335_vm1, %v4200_v59  ;;  %v4834_v35 = vsel %vm4596_vm7, %v1018_v24, %v1019_v17  ;;  %v1025_v37 = vrot.slane %v1023_v26, 4  ;;  %v3451_v34 = vcombine.low %v4815_v13, %v4826_v28  ;;  %v1033_v41 = vrot.slane %v933_v21, 5  ;;  %v3628_v13 = vld [vmem:[%s4515_s27 + $0x3c] sm:$0xf] }
  0x72   : > { %3920 = vmatprep.mubr.msk.bf16.mxu0 %vm335_vm1, %v4201_v63  ;;  %v3452_v39 = vcombine.low %v4821_v23, %v4834_v35  ;;  %v1032_v40 = vrot.slane %v1030_v31, 4  ;;  %v2436_v44 = vshrl.u32 %v3619_v22, 16  ;;  %v2439_v45 = vshll.u32 %v3619_v22, 16 }
  0x73   : > { %v4848_v42 = vsel %vm4596_vm7, %v1025_v37, %v1026_v29  ;;  %v2445_v46 = vshll.u32 %v3620_v27, 16  ;;  %v4855_v48 = vsel %vm4596_vm7, %v3446_v30, %v1030_v31  ;;  %v2449_v49 = vshrl.u32 %v3620_v27, 16  ;;  %v4204_v37 = vld [vmem:[%s4515_s27 + $0x6c] sm:$0xff]  }
  0x74   : > { %3841 = vmatmul.mubr.msk.bf16.vlgmr.msra.gmra.mrb[0].mxu1 %vm335_vm1, %v3448_v58  ;;  %v3453_v14 = vcombine.low %v4838_v36, %v4848_v42  ;;  %v2455_v50 = vshll.u32 %v3621_v32, 16  ;;  %v4864_v54 = vsel %vm4596_vm7, %v1032_v40, %v1033_v41  ;;  %v2438_v55 = vrot.slane %v2436_v44, 4  ;;  %v4203_v58 = vld [vmem:[%s4515_s27 + $0x60] sm:$0xff]  }
  0x75   : > { %3844 = vmatprep.mubr.msk.bf16.mxu1 %vm335_vm1, %v3449_v3  ;;  %3857 = vmatpush3.bf16.msra.mxu1 %v4550_v19  ;;  %v2441_v56 = vrot.slane %v2439_v45, 5  ;;  %v2447_v57 = vrot.slane %v2445_v46, 5  ;;  %v2451_v59 = vrot.slane %v2449_v49, 4  ;;  %v2460_v8 = vshrl.u32 %v3622_v38, 16  ;;  %v4213_v19 = vld [vmem:[%s5245_s1 + $0x8] sm:$0x3] }
  0x76   : > { %v2457_v60 = vrot.slane %v2455_v50, 5  ;;  %v2463_v18 = vshll.u32 %v3622_v38, 16  ;;  %4099 = vmatprep.subr.msk.bf16.mxu1 %vm360_vm0, %v4213_v19  ;;  %v2469_v62 = vshll.u32 %v3623_v51, 16  ;;  %v2473_v63 = vshrl.u32 %v3623_v51, 16  ;;  %v3629_v32 = vld [vmem:[%s4515_s27 + $0x40] sm:$0xf] }
  0x77   : > { %v2442_v61 = vor.u32 %v2441_v56, %v2438_v55  ;;  %v2479_v0 = vshll.u32 %v3624_v52, 16  ;;  %v2452_v1 = vor.u32 %v2451_v59, %v2447_v57  ;;  %v2462_v2 = vrot.slane %v2460_v8, 4  ;;  %v3630_v49 = vld [vmem:[%s4515_s27 + $0x44] sm:$0x1]  ;;  %v3631_v55 = vld [vmem:[%s4515_s27 + $0x48] sm:$0xf] }
  0x78   : > { %v2465_v3 = vrot.slane %v2463_v18, 5  ;;  %v2484_v5 = vshrl.u32 %v3625_v10, 16  ;;  %v2471_v7 = vrot.slane %v2469_v62, 5  ;;  %v2475_v9 = vrot.slane %v2473_v63, 4  ;;  %v3632_v56 = vld [vmem:[%s4515_s27 + $0x4c] sm:$0xf] }
  0x79   : > { %3921 = vmatmul.mubr.msk.bf16.gmra.mrb[8].mxu0 %vm335_vm1, %v4202_v53  ;;  %v2443_v11 = vrot.slane %v2442_v61, 4  ;;  %v2481_v6 = vrot.slane %v2479_v0, 5  ;;  %v2453_v15 = vrot.slane %v2452_v1, 4  ;;  %v2487_v22 = vshll.u32 %v3625_v10, 16 }
  0x7a   : > { %3924 = vmatprep.mubr.msk.bf16.mxu0 %vm335_vm1, %v4203_v58  ;;  %v2466_v17 = vor.u32 %v2465_v3, %v2462_v2  ;;  %v2486_v21 = vrot.slane %v2484_v5, 4  ;;  %v2476_v25 = vor.u32 %v2475_v9, %v2471_v7  ;;  %v2493_v26 = vshll.u32 %v3626_v16, 16  ;;  %v3634_v5 = vld [vmem:[%s4515_s27 + $0x54] sm:$0xf] }
  0x7b   : > { %v2448_v24 = vsel %vm4568_vm6, %v2443_v11, %v2447_v57  ;;  %v2497_v27 = vshrl.u32 %v3626_v16, 16  ;;  %v2458_v28 = vsel %vm4568_vm6, %v2453_v15, %v2457_v60  ;;  %v2489_v30 = vrot.slane %v2487_v22, 5  ;;  %v3633_v60 = vld [vmem:[%s4515_s27 + $0x50] sm:$0x1] }
  0x7c   : > { %3845 = vmatmul.mubr.msk.bf16.gmra.mrb[4].mxu1 %vm335_vm1, %v3450_v33  ;;  %v2467_v29 = vrot.slane %v2466_v17, 4  ;;  %v2503_v31 = vshll.u32 %v3627_v12, 16  ;;  %v3644_v38 = vcombine.low %v2448_v24, %v2458_v28  ;;  %v2477_v40 = vrot.slane %v2476_v25, 4 }
  0x7d   : > { %3848 = vmatprep.mubr.msk.bf16.mxu1 %vm335_vm1, %v3451_v34  ;;  %v2495_v41 = vrot.slane %v2493_v26, 5  ;;  %v2499_v44 = vrot.slane %v2497_v27, 4  ;;  %v2490_v45 = vor.u32 %v2489_v30, %v2486_v21  ;;  %v2508_v50 = vshrl.u32 %v3628_v13, 16  ;;  %v4205_v27 = vld [vmem:[%s4515_s27 + $0xc] sm:$0xff]  }
  0x7e   : > { %v2472_v33 = vsel %vm4568_vm6, %v2467_v29, %v2471_v7  ;;  %v2505_v46 = vrot.slane %v2503_v31, 5  ;;  %v2482_v51 = vsel %vm4568_vm6, %v2477_v40, %v2481_v6  ;;  %v2511_v53 = vshll.u32 %v3628_v13, 16  ;;  %v3635_v13 = vld [vmem:[%s4515_s27 + $0x58] sm:$0xf]  ;;  %v3638_v29 = vld [vmem:[%s4515_s27 + $0x64] sm:$0xf] }
  0x7f   : > { %v2500_v52 = vor.u32 %v2499_v44, %v2495_v41  ;;  %v2517_v34 = vshll.u32 %v3629_v32, 16  ;;  %v3645_v57 = vcombine.low %v2472_v33, %v2482_v51  ;;  %v2491_v10 = vrot.slane %v2490_v45, 4 }
  0x80   : > { %v2510_v58 = vrot.slane %v2508_v50, 4  ;;  %v2521_v59 = vshrl.u32 %v3629_v32, 16  ;;  %v2513_v18 = vrot.slane %v2511_v53, 5  ;;  %v2527_v61 = vshll.u32 %v3630_v49, 16  ;;  %v3639_v50 = vld [vmem:[%s4515_s27 + $0x68] sm:$0x1] }
  0x81   : > { %3925 = vmatmul.mubr.msk.bf16.gmra.mrb[12].mxu0 %vm335_vm1, %v4204_v37  ;;  %v2501_v8 = vrot.slane %v2500_v52, 4  ;;  %v2519_v19 = vrot.slane %v2517_v34, 5  ;;  %v2496_v62 = vsel %vm4568_vm6, %v2491_v10, %v2495_v41  ;;  %v2532_v0 = vshrl.u32 %v3631_v55, 16 }
  0x82   : > { %3930 = vmatprep.mubr.msk.bf16.mxu0 %vm335_vm1, %v3644_v38  ;;  %v2523_v63 = vrot.slane %v2521_v59, 4  ;;  %v2535_v16 = vshll.u32 %v3631_v55, 16  ;;  %v2514_v2 = vor.u32 %v2513_v18, %v2510_v58  ;;  %v2529_v3 = vrot.slane %v2527_v61, 5 }
  0x83   : > { %v2506_v1 = vsel %vm4568_vm6, %v2501_v8, %v2505_v46  ;;  %v2541_v12 = vshll.u32 %v3632_v56, 16  ;;  %v2534_v9 = vrot.slane %v2532_v0, 4  ;;  %v2545_v21 = vshrl.u32 %v3632_v56, 16  ;;  %v3640_v56 = vld [vmem:[%s4515_s27 + $0x6c] sm:$0xf] }
  0x84   : > { %3849 = vmatmul.mubr.msk.bf16.gmra.mrb[8].mxu1 %vm335_vm1, %v3452_v39  ;;  %v3646_v11 = vcombine.low %v2496_v62, %v2506_v1  ;;  %v2524_v7 = vor.u32 %v2523_v63, %v2519_v19  ;;  %v2537_v6 = vrot.slane %v2535_v16, 5  ;;  %v2515_v15 = vrot.slane %v2514_v2, 4  ;;  %v3636_v39 = vld [vmem:[%s4515_s27 + $0x5c] sm:$0x1]  ;;  %v3642_v62 = vld [vmem:[%s4515_s27 + $0x74] sm:$0x1] }
  0x85   : > { %3852 = vmatprep.mubr.msk.bf16.mxu1 %vm335_vm1, %v3453_v14  ;;  %v2543_v17 = vrot.slane %v2541_v12, 5  ;;  %v2551_v22 = vshll.u32 %v3633_v60, 16  ;;  %v2556_v24 = vshrl.u32 %v3634_v5, 16  ;;  %v2559_v25 = vshll.u32 %v3634_v5, 16  ;;  %v3637_v14 = vld [vmem:[%s4515_s27 + $0x60] sm:$0xf] }
  0x86   : > { %v2525_v23 = vrot.slane %v2524_v7, 4  ;;  %v2538_v35 = vor.u32 %v2537_v6, %v2534_v9  ;;  %v3454_v26 = vcombine.low %v4855_v48, %v4864_v54  ;;  %v2520_v36 = vsel %vm4568_vm6, %v2515_v15, %v2519_v19  ;;  %v3641_v60 = vld [vmem:[%s4515_s27 + $0x70] sm:$0xf]  ;;  %v3660_v2 = vld [vmem:[%s4515_s27 + $0x18] sm:$0xe]  ;;  %v4207_v6 = vld [vmem:[%s4515_s27 + $0x24] sm:$0xff]  }
  0x87   : > { %v2547_v42 = vrot.slane %v2545_v21, 4  ;;  %v2565_v28 = vshll.u32 %v3635_v13, 16  ;;  %v2553_v31 = vrot.slane %v2551_v22, 5  ;;  %v2558_v32 = vrot.slane %v2556_v24, 4  ;;  %v3661_v9 = vld [vmem:[%s4515_s27 + $0x1c] sm:$0xf] }
  0x88   : > { %v2539_v30 = vrot.slane %v2538_v35, 4  ;;  %v2561_v37 = vrot.slane %v2559_v25, 5  ;;  %v2530_v38 = vsel %vm4568_vm6, %v2525_v23, %v2529_v3  ;;  %v2569_v54 = vshrl.u32 %v3635_v13, 16  ;;  %v4206_v3 = vld [vmem:[%s4515_s27 + $0x18] sm:$0xff]   ;;  %v3662_v22 = vld [vmem:[%s4515_s27 + $0x20] sm:$0x1] }
  0x89   : > { %3931 = vmatmul.mubr.msk.bf16.vlgmr.msra.gmra.mrb[0].mxu0 %vm335_vm1, %v3645_v57  ;;  %v2548_v40 = vor.u32 %v2547_v42, %v2543_v17  ;;  %v4920_v48 = vrot.slane %v2565_v28, 5  ;;  %v2575_v33 = vshll.u32 %v3636_v39, 16  ;;  %v2580_v45 = vshrl.u32 %v3637_v14, 16  ;;  %v3663_v25 = vld [vmem:[%s4515_s27 + $0x24] sm:$0xe] }
  0x8a   : > { %3947 = vmatpush3.bf16.msra.mxu0 %v4554_v20  ;;  %3934 = vmatprep.mubr.msk.bf16.mxu0 %vm335_vm1, %v3646_v11  ;;  %v2544_v41 = vsel %vm4568_vm6, %v2539_v30, %v2543_v17  ;;  %v2562_v44 = vor.u32 %v2561_v37, %v2558_v32  ;;  %v2571_v49 = vrot.slane %v2569_v54, 4  ;;  %v2583_v51 = vshll.u32 %v3637_v14, 16  ;;  %v3664_v28 = vld [vmem:[%s4515_s27 + $0x28] sm:$0xf]  ;;  %v3508_v32 = vld [vmem:[%s4515_s27 + $0x3c] sm:$0xf] }
  0x8b   : > { %v2549_v46 = vrot.slane %v2548_v40, 4  ;;  %v2589_v52 = vshll.u32 %v3638_v29, 16  ;;  %v3647_v53 = vcombine.low %v2520_v36, %v2530_v38  ;;  %v2582_v34 = vrot.slane %v2580_v45, 4 }
  0x8c   : > { %3853 = vmatmul.mubr.msk.bf16.gmra.mrb[12].mxu1 %vm335_vm1, %v3454_v26  ;;  %v2563_v20 = vrot.slane %v2562_v44, 4  ;;  %v2593_v55 = vshrl.u32 %v3638_v29, 16  ;;  %v2572_v10 = vor.u32 %v2571_v49, %v4920_v48  ;;  %v2585_v58 = vrot.slane %v2583_v51, 5 }
  0x8d   : > { %3858 = vmatprep.mubr.msk.bf16.mxu1 %vm335_vm1, %v4205_v27  ;;  %v2554_v57 = vsel %vm4568_vm6, %v2549_v46, %v2553_v31  ;;  %v2591_v59 = vrot.slane %v2589_v52, 5  ;;  %v2577_v18 = vrot.slane %v2575_v33, 5  ;;  %v2599_v61 = vshll.u32 %v3639_v50, 16  ;;  %v3510_v50 = vld [vmem:[%s4515_s27 + $0x44] sm:$0x1] }
  0x8e   : > { %v3648_v8 = vcombine.low %v2544_v41, %v2554_v57  ;;  %v2595_v19 = vrot.slane %v2593_v55, 4  ;;  %v2573_v63 = vrot.slane %v2572_v10, 4  ;;  %v2586_v0 = vor.u32 %v2585_v58, %v2582_v34  ;;  %v3511_v57 = vld [vmem:[%s4515_s27 + $0x48] sm:$0xf]  ;;  %v4209_v10 = vld [vmem:[%s4515_s27 + $0x3c] sm:$0xff]  }
  0x8f   : > { %v2604_v16 = vshrl.u32 %v3640_v56, 16  ;;  %v2607_v1 = vshll.u32 %v3640_v56, 16  ;;  %v2601_v5 = vrot.slane %v2599_v61, 5  ;;  %v2613_v11 = vshll.u32 %v3641_v60, 16 }
  0x90   : > { %v2596_v12 = vor.u32 %v2595_v19, %v2591_v59  ;;  %v2617_v7 = vshrl.u32 %v3641_v60, 16  ;;  %v2568_v13 = vsel %vm4568_vm6, %v2563_v20, %v4920_v48  ;;  %v2587_v15 = vrot.slane %v2586_v0, 4  ;;  %v3665_v48 = vld [vmem:[%s4515_s27 + $0x2c] sm:$0x1] }
  0x91   : > { %3935 = vmatmul.mubr.msk.bf16.gmra.mrb[4].mxu0 %vm335_vm1, %v3647_v53  ;;  %v2606_v17 = vrot.slane %v2604_v16, 4  ;;  %v2609_v21 = vrot.slane %v2607_v1, 5  ;;  %v2578_v23 = vsel %vm4568_vm6, %v2573_v63, %v2577_v18  ;;  %v2615_v39 = vrot.slane %v2613_v11, 5  ;;  %v4208_v53 = vld [vmem:[%s4515_s27 + $0x30] sm:$0xff]  }
  0x92   : > { %3938 = vmatprep.mubr.msk.bf16.mxu0 %vm335_vm1, %v3648_v8  ;;  %v2597_v35 = vrot.slane %v2596_v12, 4  ;;  %v2619_v24 = vrot.slane %v2617_v7, 4  ;;  %v2592_v26 = vsel %vm4568_vm6, %v2587_v15, %v2591_v59  ;;  %v2623_v36 = vshll.u32 %v3642_v62, 16  ;;  %v3512_v8 = vld [vmem:[%s4515_s27 + $0x4c] sm:$0xf] }
  0x93   : > { %v2610_v27 = vor.u32 %v2609_v21, %v2606_v17  ;;  %v3685_v42 = vrot.slane %v3660_v2, 9  ;;  %v2875_v30 = vrot.slane %v3661_v9, 5  ;;  %v2878_v31 = vrot.slane %v3662_v22, 5  ;;  %v3513_v16 = vld [vmem:[%s4515_s27 + $0x50] sm:$0x1] }
  0x94   : > { %3859 = vmatmul.mubr.msk.bf16.vlgmr.msra.gmra.mrb[0].mxu1 %vm335_vm1, %v4206_v3  ;;  %v2602_v14 = vsel %vm4568_vm6, %v2597_v35, %v2601_v5  ;;  %v2620_v29 = vor.u32 %v2619_v24, %v2615_v39  ;;  %v3649_v37 = vcombine.low %v2568_v13, %v2578_v23  ;;  %v2625_v40 = vrot.slane %v2623_v36, 5  ;;  %v3666_v3 = vld [vmem:[%s4515_s27 + $0x30] sm:$0xe]  ;;  %v3667_v9 = vld [vmem:[%s4515_s27 + $0x34] sm:$0xf] }
  0x95   : > { %3862 = vmatprep.mubr.msk.bf16.mxu1 %vm335_vm1, %v4207_v6  ;;  %3965 = vmatpush3.bf16.msra.mxu1 %v4491_v4  ;;  %v2611_v38 = vrot.slane %v2610_v27, 4  ;;  %v3686_v54 = vrot.slane %v3663_v25, 9  ;;  %v3650_v41 = vcombine.low %v2592_v26, %v2602_v14  ;;  %v2877_v33 = vrot.slane %v2875_v30, 4  ;;  %v3509_v4 = vld [vmem:[%s4515_s27 + $0x40] sm:$0xf] }
  0x96   : > { %v2621_v44 = vrot.slane %v2620_v29, 4  ;;  %v2882_v45 = vrot.slane %v3664_v28, 5  ;;  %v2876_v49 = vsel %vm4596_vm7, %v3685_v42, %v2875_v30  ;;  %v1585_v51 = vshrl.u32 %v3508_v32, 16  ;;  %v3668_v21 = vld [vmem:[%s4515_s27 + $0x38] sm:$0x1]  ;;  %v4210_v28 = vld [vmem:[%s4515_s27 + $0x48] sm:$0xff]  }
  0x97   : > { %v2616_v46 = vsel %vm4568_vm6, %v2611_v38, %v2615_v39  ;;  %v1588_v52 = vshll.u32 %v3508_v32, 16  ;;  %v2879_v34 = vsel %vm4596_vm7, %v2877_v33, %v2878_v31  ;;  %v2885_v56 = vrot.slane %v3665_v48, 5  ;;  %v3670_v24 = vld [vmem:[%s4515_s27 + $0x40] sm:$0xf]  ;;  %v3514_v42 = vld [vmem:[%s4515_s27 + $0x54] sm:$0xf] }
  0x98   : > { %v2626_v20 = vsel %vm4568_vm6, %v2621_v44, %v2625_v40  ;;  %v2884_v55 = vrot.slane %v2882_v45, 4  ;;  %v4974_v58 = vsel %vm4596_vm7, %v3686_v54, %v2882_v45  ;;  %v1587_v59 = vrot.slane %v1585_v51, 4  ;;  %v3669_v30 = vld [vmem:[%s4515_s27 + $0x3c] sm:$0xe]  ;;  %v4211_v31 = vld [vmem:[%s4515_s27 + $0x54] sm:$0xff]  }
  0x99   : > { %3939 = vmatmul.mubr.msk.bf16.gmra.mrb[8].mxu0 %vm335_vm1, %v3649_v37  ;;  %v1590_v60 = vrot.slane %v1588_v52, 5  ;;  %v3651_v18 = vcombine.low %v2616_v46, %v2626_v20  ;;  %v1594_v19 = vshll.u32 %v3509_v4, 16  ;;  %v1598_v61 = vshrl.u32 %v3509_v4, 16  ;;  %v3671_v48 = vld [vmem:[%s4515_s27 + $0x44] sm:$0x1] }
  0x9a   : > { %3942 = vmatprep.mubr.msk.bf16.mxu0 %vm335_vm1, %v3650_v41  ;;  %v1604_v62 = vshll.u32 %v3510_v50, 16  ;;  %v3693_v63 = vcombine.low %v2876_v49, %v2879_v34  ;;  %v1609_v1 = vshrl.u32 %v3511_v57, 16  ;;  %v1612_v2 = vshll.u32 %v3511_v57, 16  ;;  %v3515_v33 = vld [vmem:[%s4515_s27 + $0x58] sm:$0xf] }
  0x9b   : > { %v1591_v0 = vor.u32 %v1590_v60, %v1587_v59  ;;  %v4983_v12 = vsel %vm4596_vm7, %v2884_v55, %v2885_v56  ;;  %v1596_v5 = vrot.slane %v1594_v19, 5  ;;  %v1600_v11 = vrot.slane %v1598_v61, 4  ;;  %v3516_v51 = vld [vmem:[%s4515_s27 + $0x5c] sm:$0x1]  ;;  %v3517_v52 = vld [vmem:[%s4515_s27 + $0x60] sm:$0xf] }
  0x9c   : > { %3863 = vmatmul.mubr.msk.bf16.gmra.mrb[4].mxu1 %vm335_vm1, %v4208_v53  ;;  %v1618_v7 = vshll.u32 %v3512_v8, 16  ;;  %v1611_v13 = vrot.slane %v1609_v1, 4  ;;  %v1614_v15 = vrot.slane %v1612_v2, 5  ;;  %v1622_v17 = vshrl.u32 %v3512_v8, 16  ;;  %v3518_v59 = vld [vmem:[%s4515_s27 + $0x64] sm:$0xf] }
  0x9d   : > { %3866 = vmatprep.mubr.msk.bf16.mxu1 %vm335_vm1, %v4209_v10  ;;  %v1592_v6 = vrot.slane %v1591_v0, 4  ;;  %v1601_v22 = vor.u32 %v1600_v11, %v1596_v5  ;;  %v1606_v23 = vrot.slane %v1604_v62, 5  ;;  %v1628_v39 = vshll.u32 %v3513_v16, 16  ;;  %v3672_v61 = vld [vmem:[%s4515_s27 + $0x48] sm:$0xe]  ;;  %v4212_v2 = vld [vmem:[%s4515_s27 + $0x60] sm:$0xff]  }
  0x9e   : > { %v4988_v35 = vrot.slane %v1618_v7, 5  ;;  %v1615_v25 = vor.u32 %v1614_v15, %v1611_v13  ;;  %v1624_v26 = vrot.slane %v1622_v17, 4  ;;  %v3687_v27 = vrot.slane %v3666_v3, 9  ;;  %v3673_v1 = vld [vmem:[%s4515_s27 + $0x4c] sm:$0xf] }
  0x9f   : > { %v2889_v36 = vrot.slane %v3667_v9, 5  ;;  %v1602_v14 = vrot.slane %v1601_v22, 4  ;;  %v2892_v29 = vrot.slane %v3668_v21, 5  ;;  %v3694_v32 = vcombine.low %v4974_v58, %v4983_v12  ;;  %v3674_v17 = vld [vmem:[%s4515_s27 + $0x50] sm:$0x1] }
  0xa0   : > { %v1597_v37 = vsel %vm4568_vm6, %v1592_v6, %v1596_v5  ;;  %v5000_v38 = vrot.slane %v1615_v25, 4  ;;  %v1625_v41 = vor.u32 %v1624_v26, %v4988_v35  ;;  %v2896_v44 = vrot.slane %v3670_v24, 5  ;;  %v3519_v5 = vld [vmem:[%s4515_s27 + $0x68] sm:$0x1]  ;;  %v3675_v21 = vld [vmem:[%s4515_s27 + $0x54] sm:$0xe] }
  0xa1   : > { %3943 = vmatmul.mubr.msk.bf16.gmra.mrb[12].mxu0 %vm335_vm1, %v3651_v18  ;;  %v2891_v40 = vrot.slane %v2889_v36, 4  ;;  %v1607_v54 = vsel %vm4568_vm6, %v1602_v14, %v1606_v23  ;;  %v1633_v45 = vshrl.u32 %v3514_v42, 16  ;;  %v5008_v46 = vrot.slane %v1628_v39, 5  ;;  %v3676_v25 = vld [vmem:[%s4515_s27 + $0x58] sm:$0xf] }
  0xa2   : > { %3948 = vmatprep.mubr.msk.bf16.mxu0 %vm335_vm1, %v3693_v63  ;;  %v2890_v49 = vsel %vm4596_vm7, %v3687_v27, %v2889_v36  ;;  %v3688_v50 = vrot.slane %v3669_v30, 9  ;;  %v3525_v53 = vcombine.low %v1597_v37, %v1607_v54  ;;  %v1621_v20 = vsel %vm4568_vm6, %v5000_v38, %v4988_v35 }
  0xa3   : > { %v2893_v4 = vsel %vm4596_vm7, %v2891_v40, %v2892_v29  ;;  %v2898_v34 = vrot.slane %v2896_v44, 4  ;;  %v2899_v55 = vrot.slane %v3671_v48, 5  ;;  %v1635_v56 = vrot.slane %v1633_v45, 4 }
  0xa4   : > { %3867 = vmatmul.mubr.msk.bf16.gmra.mrb[8].mxu1 %vm335_vm1, %v4210_v28  ;;  %v1636_v57 = vshll.u32 %v3514_v42, 16  ;;  %v1642_v10 = vshll.u32 %v3515_v33, 16  ;;  %v1646_v58 = vshrl.u32 %v3515_v33, 16  ;;  %v1626_v60 = vrot.slane %v1625_v41, 4  ;;  %v3677_v28 = vld [vmem:[%s4515_s27 + $0x5c] sm:$0x1] }
  0xa5   : > { %3870 = vmatprep.mubr.msk.bf16.mxu1 %vm335_vm1, %v4211_v31  ;;  %v3695_v8 = vcombine.low %v2890_v49, %v2893_v4  ;;  %v1652_v18 = vshll.u32 %v3516_v51, 16  ;;  %v1657_v19 = vshrl.u32 %v3517_v52, 16  ;;  %v2897_v62 = vsel %vm4596_vm7, %v3688_v50, %v2896_v44  ;;  %v3679_v41 = vld [vmem:[%s4515_s27 + $0x64] sm:$0xf]  ;;  %v3680_v49 = vld [vmem:[%s4515_s27 + $0x68] sm:$0x1] }
  0xa6   : > { %v1638_v63 = vrot.slane %v1636_v57, 5  ;;  %v1644_v0 = vrot.slane %v1642_v10, 5  ;;  %v1648_v16 = vrot.slane %v1646_v58, 4  ;;  %v2900_v3 = vsel %vm4596_vm7, %v2898_v34, %v2899_v55 }
  0xa7   : > { %v1654_v12 = vrot.slane %v1652_v18, 5  ;;  %v1660_v11 = vshll.u32 %v3517_v52, 16  ;;  %v1666_v7 = vshll.u32 %v3518_v59, 16  ;;  %v1659_v13 = vrot.slane %v1657_v19, 4  ;;  %v3682_v52 = vld [vmem:[%s4515_s27 + $0x70] sm:$0xf] }
  0xa8   : > { %v1639_v9 = vor.u32 %v1638_v63, %v1635_v56  ;;  %v1649_v6 = vor.u32 %v1648_v16, %v1644_v0  ;;  %v1670_v15 = vshrl.u32 %v3518_v59, 16  ;;  %v3689_v39 = vrot.slane %v3672_v61, 9  ;;  %v3681_v18 = vld [vmem:[%s4515_s27 + $0x6c] sm:$0xe]  ;;  %v3683_v19 = vld [vmem:[%s4515_s27 + $0x74] sm:$0x1] }
  0xa9   : > { %3949 = vmatmul.mubr.msk.bf16.vlgmr.msra.gmra.mrb[0].mxu0 %vm335_vm1, %v3694_v32  ;;  %v1662_v22 = vrot.slane %v1660_v11, 5  ;;  %v1668_v23 = vrot.slane %v1666_v7, 5  ;;  %v2903_v24 = vrot.slane %v3673_v1, 5  ;;  %v1631_v26 = vsel %vm4568_vm6, %v1626_v60, %v5008_v46  ;;  %v3678_v32 = vld [vmem:[%s4515_s27 + $0x60] sm:$0xe]  ;;  %s5089_s27 = scalar_lea.vmem [#allocation3], %s3403_s5 }
  0xaa   : > { %3952 = vmatprep.mubr.msk.bf16.mxu0 %vm335_vm1, %v3695_v8  ;;  %v1640_v27 = vrot.slane %v1639_v9, 4  ;;  %v1650_v36 = vrot.slane %v1649_v6, 4  ;;  %v1672_v42 = vrot.slane %v1670_v15, 4  ;;  %v1676_v14 = vshll.u32 %v3519_v5, 16  ;;  %s3226_s10 = sshll.u32 %s5089_s27, 4  ;;  %s3202_s5 = scalar_lea.sflag [#allocation4], %s5086_s14  ;;  %s5107_s10 = int_to_ptr.vmem [resolvable:$true] %s3226_s10 }
  0xab   : > { %v2904_v29 = vsel %vm4596_vm7, %v3689_v39, %v2903_v24  ;;  %v2905_v30 = vrot.slane %v2903_v24, 4  ;;  %v2906_v31 = vrot.slane %v3674_v17, 5  ;;  %v3696_v37 = vcombine.low %v2897_v62, %v2900_v3  ;;  %s4214_s6 = scalar_lea.vmem %s5107_s10, 2048  ;;  %p4221_p4 = scmp.lt.s32.totalorder %s5107_s10, %s4219_s9 }
  0xac   : > { %3871 = vmatmul.mubr.msk.bf16.gmra.mrb[12].mxu1 %vm335_vm1, %v4212_v2  ;;  %v1645_v40 = vsel %vm4568_vm6, %v1640_v27, %v1644_v0  ;;  %v1663_v48 = vor.u32 %v1662_v22, %v1659_v13  ;;  %v1673_v54 = vor.u32 %v1672_v42, %v1668_v23  ;;  %v1655_v44 = vsel %vm4568_vm6, %v1650_v36, %v1654_v12  ;;  %p4215_p0 = scmp.ne.s32.totalorder %s5107_s10, %s4214_s6  ;;  %p4222_p5 = scmp.lt.s32.totalorder %s4220_s24, %s4214_s6 }
  0xad   : > { %3884 = vmatprep.mubr.msk.bf16.mxu1 %vm335_vm1, %v3525_v53  ;;  %v2907_v33 = vsel %vm4596_vm7, %v2905_v30, %v2906_v31  ;;  %v3690_v45 = vrot.slane %v3675_v21, 9  ;;  %v2910_v46 = vrot.slane %v3676_v25, 5  ;;  %v2913_v50 = vrot.slane %v3677_v28, 5 }
  0xae   : > { %v3697_v4 = vcombine.low %v2904_v29, %v2907_v33  ;;  %v3691_v51 = vrot.slane %v3678_v32, 9  ;;  %v3526_v53 = vcombine.low %v1621_v20, %v1631_v26  ;;  %v1678_v34 = vrot.slane %v1676_v14, 5  ;;  %p4216_p1 = pnand %p4215_p0, %p4453_p3  ;;  %p4223_p6 = por %p4222_p5, %p4221_p4 }
  0xaf   : > { %v2912_v55 = vrot.slane %v2910_v46, 4  ;;  %v2917_v56 = vrot.slane %v3679_v41, 5  ;;  %v3527_v57 = vcombine.low %v1645_v40, %v1655_v44  ;;  %v1664_v10 = vrot.slane %v1663_v48, 4 }
  0xb0   : > { %v1674_v58 = vrot.slane %v1673_v54, 4  ;;  %v2920_v59 = vrot.slane %v3680_v49, 5  ;;  %v2911_v60 = vsel %vm4596_vm7, %v3690_v45, %v2910_v46  ;;  %v2924_v20 = vrot.slane %v3682_v52, 5  ;;  %p4217_p2 = pneg %p4216_p1 }
  0xb1   : > { %3953 = vmatmul.mubr.msk.bf16.gmra.mrb[4].mxu0 %vm335_vm1, %v3696_v37  ;;  %v2914_v35 = vsel %vm4596_vm7, %v2912_v55, %v2913_v50  ;;  %v2919_v38 = vrot.slane %v2917_v56, 4  ;;  %v2918_v8 = vsel %vm4596_vm7, %v3691_v51, %v2917_v56  ;;  %v1669_v62 = vsel %vm4568_vm6, %v1664_v10, %v1668_v23 }
  0xb2   : > { %3956 = vmatprep.mubr.msk.bf16.mxu0 %vm335_vm1, %v3697_v4  ;;  %v1679_v63 = vsel %vm4568_vm6, %v1674_v58, %v1678_v34  ;;  %v3698_v0 = vcombine.low %v2911_v60, %v2914_v35  ;;  %v3692_v1 = vrot.slane %v3681_v18, 9  ;;  %v2926_v2 = vrot.slane %v2924_v20, 4  ;;  %p4224_p7 = pnand %p4223_p6, %p4217_p2 }
  0xb3   : > { %v2921_v61 = vsel %vm4596_vm7, %v2919_v38, %v2920_v59  ;;  %v2927_v3 = vrot.slane %v3683_v19, 5  ;;  %v3528_v12 = vcombine.low %v1669_v62, %v1679_v63 }
  0xb4   : > { %3885 = vmatmul.mubr.msk.bf16.vlgmr.msra.gmra.mrb[8].mxu1 %vm335_vm1, %v3526_v53  ;;  %v3699_v16 = vcombine.low %v2918_v8, %v2921_v61  ;;  %v2925_v5 = vsel %vm4596_vm7, %v3692_v1, %v2924_v20 }
  0xb5   : > { %3888 = vmatprep.mubr.msk.bf16.mxu1 %vm335_vm1, %v3527_v57  ;;  %v2928_v11 = vsel %vm4596_vm7, %v2926_v2, %v2927_v3 }
  0xb6   : > { %v3700_v47 = vcombine.low %v2925_v5, %v2928_v11 }
  0xb9   : > { %3957 = vmatmul.mubr.msk.bf16.gmra.mrb[8].mxu0 %vm335_vm1, %v3698_v0 }
  0xba   : > { %3960 = vmatprep.mubr.msk.bf16.mxu0 %vm335_vm1, %v3699_v16 }
  0xbc   : > { %3889 = vmatmul.mubr.msk.bf16.gmra.mrb[12].mxu1 %vm335_vm1, %v3528_v12 }
  0xc1   : > { %3961 = vmatmul.mubr.msk.bf16.gmra.mrb[12].mxu0 %vm335_vm1, %v3700_v47 }
 0x167   : > { %v3860_v7 = vpop.f32.mrb[0].mxu1 }
 0x168   : > { %v1351_v9 = vpop.f32.mrb[1].mxu1 }
 0x169   : > { %v3861_v6 = vpop.f32.mrb[2].mxu1 }
 0x16a   : > { %v1354_v13 = vpop.f32.mrb[3].mxu1 }
 0x16f   : > { %v3864_v15 = vpop.f32.mrb[4].mxu1 }
 0x170   : > { %v1367_v17 = vpop.f32.mrb[5].mxu1 }
 0x171   : > { %v3865_v21 = vpop.f32.mrb[6].mxu1 }
 0x172   : > { %v1370_v22 = vpop.f32.mrb[7].mxu1 }
 0x17c   : > { %v3950_v23 = vpop.f32.mrb[0].mxu0 }
 0x17d   : > { %v3966_v43 = vadd.f32 %v3950_v23, %v3860_v7  ;;  %v3014_v39 = vpop.f32.mrb[1].mxu0 }
 0x17e   : > { %v3967_v24 = vadd.f32 %v3014_v39, %v1351_v9  ;;  %v3951_v25 = vpop.f32.mrb[2].mxu0 }
 0x17f   : > { %3127 = vst [vmem:[%s5089_s27 + $0x10] sm:$0xff] %v3966_v43  ;;  %v3968_v26 = vadd.f32 %v3951_v25, %v3861_v6  ;;  %v3017_v27 = vpop.f32.mrb[3].mxu0  ;;  %v3165_v29 = vmul.f32 %v3966_v43, %v3966_v43 }
 0x180   : > { %3125 = vst [vmem:[%s5089_s27] sm:$0xff] %v3967_v24  ;;  %v3969_v36 = vadd.f32 %v3017_v27, %v1354_v13  ;;  %v3163_v42 = vmul.f32 %v3967_v24, %v3967_v24 }
 0x181   : > { %3128 = vst [vmem:[%s5089_s27 + $0x18] sm:$0xff] %v3968_v26  ;;  %v3166_v48 = vmul.f32 %v3968_v26, %v3968_v26 }
 0x182   : > { %3126 = vst [vmem:[%s5089_s27 + $0x8] sm:$0xff] %v3969_v36  ;;  %v3141_v28 = vadd.f32 %v3969_v36, %v3967_v24  ;;  %v3164_v14 = vmul.f32 %v3969_v36, %v3969_v36 }
 0x184   : > { %v3142_v30 = vadd.f32 %v3966_v43, %v3141_v28  ;;  %v3179_v31 = vadd.f32 %v3164_v14, %v3163_v42  ;;  %v3954_v32 = vpop.f32.mrb[4].mxu0 }
 0x185   : > { %v3970_v37 = vadd.f32 %v3954_v32, %v3864_v15  ;;  %v3030_v40 = vpop.f32.mrb[5].mxu0 }
 0x186   : > { %v3180_v54 = vadd.f32 %v3179_v31, %v3165_v29  ;;  %v3971_v41 = vadd.f32 %v3030_v40, %v1367_v17  ;;  %v3143_v44 = vadd.f32 %v3968_v26, %v3142_v30  ;;  %v3955_v33 = vpop.f32.mrb[6].mxu0 }
 0x187   : > { %v3886_v45 = vpop.f32.mrb[8].mxu1  ;;  %3131 = vst [vmem:[%s5089_s27 + $0x30] sm:$0xff] %v3970_v37  ;;  %v3972_v46 = vadd.f32 %v3955_v33, %v3865_v21  ;;  %v3033_v49 = vpop.f32.mrb[7].mxu0  ;;  %v3169_v58 = vmul.f32 %v3970_v37, %v3970_v37 }
 0x188   : > { %v1797_v4 = vpop.f32.mrb[9].mxu1  ;;  %3129 = vst [vmem:[%s5089_s27 + $0x20] sm:$0xff] %v3971_v41  ;;  %v3144_v50 = vadd.f32 %v3971_v41, %v3143_v44  ;;  %v3167_v51 = vmul.f32 %v3971_v41, %v3971_v41  ;;  %v3181_v52 = vadd.f32 %v3180_v54, %v3166_v48  ;;  %v3973_v53 = vadd.f32 %v3033_v49, %v1370_v22 }
 0x189   : > { %v3887_v34 = vpop.f32.mrb[10].mxu1  ;;  %3132 = vst [vmem:[%s5089_s27 + $0x38] sm:$0xff] %v3972_v46  ;;  %v3170_v8 = vmul.f32 %v3972_v46, %v3972_v46 }
 0x18a   : > { %v3182_v55 = vadd.f32 %v3181_v52, %v3167_v51  ;;  %v1800_v56 = vpop.f32.mrb[11].mxu1  ;;  %3130 = vst [vmem:[%s5089_s27 + $0x28] sm:$0xff] %v3973_v53  ;;  %v3145_v57 = vadd.f32 %v3973_v53, %v3144_v50  ;;  %v3168_v10 = vmul.f32 %v3973_v53, %v3973_v53 }
 0x18c   : > { %v3146_v59 = vadd.f32 %v3970_v37, %v3145_v57  ;;  %v3183_v60 = vadd.f32 %v3182_v55, %v3168_v10  ;;  %v3958_v35 = vpop.f32.mrb[8].mxu0 }
 0x18d   : > { %v3974_v38 = vadd.f32 %v3958_v35, %v3886_v45  ;;  %v3046_v20 = vpop.f32.mrb[9].mxu0 }
 0x18e   : > { %v3184_v18 = vadd.f32 %v3183_v60, %v3169_v58  ;;  %v3975_v19 = vadd.f32 %v3046_v20, %v1797_v4  ;;  %v3147_v61 = vadd.f32 %v3972_v46, %v3146_v59  ;;  %v3959_v62 = vpop.f32.mrb[10].mxu0 }
 0x18f   : > { %v3890_v63 = vpop.f32.mrb[12].mxu1  ;;  %3135 = vst [vmem:[%s5089_s27 + $0x50] sm:$0xff] %v3974_v38  ;;  %v3976_v0 = vadd.f32 %v3959_v62, %v3887_v34  ;;  %v3049_v16 = vpop.f32.mrb[11].mxu0  ;;  %v3173_v13 = vmul.f32 %v3974_v38, %v3974_v38 }
 0x190   : > { %v1813_v1 = vpop.f32.mrb[13].mxu1  ;;  %3133 = vst [vmem:[%s5089_s27 + $0x40] sm:$0xff] %v3975_v19  ;;  %v3148_v2 = vadd.f32 %v3975_v19, %v3147_v61  ;;  %v3171_v3 = vmul.f32 %v3975_v19, %v3975_v19  ;;  %v3185_v12 = vadd.f32 %v3184_v18, %v3170_v8  ;;  %v3977_v5 = vadd.f32 %v3049_v16, %v1800_v56 }
 0x191   : > { %v3891_v11 = vpop.f32.mrb[14].mxu1  ;;  %3136 = vst [vmem:[%s5089_s27 + $0x58] sm:$0xff] %v3976_v0  ;;  %v3174_v43 = vmul.f32 %v3976_v0, %v3976_v0 }
 0x192   : > { %v3186_v47 = vadd.f32 %v3185_v12, %v3171_v3  ;;  %v1816_v7 = vpop.f32.mrb[15].mxu1  ;;  %3134 = vst [vmem:[%s5089_s27 + $0x48] sm:$0xff] %v3977_v5  ;;  %v3149_v9 = vadd.f32 %v3977_v5, %v3148_v2  ;;  %v3172_v6 = vmul.f32 %v3977_v5, %v3977_v5 }
 0x194   : > { %v3150_v15 = vadd.f32 %v3974_v38, %v3149_v9  ;;  %v3187_v17 = vadd.f32 %v3186_v47, %v3172_v6  ;;  %v3962_v21 = vpop.f32.mrb[12].mxu0 }
 0x195   : > { %v3978_v22 = vadd.f32 %v3962_v21, %v3890_v63  ;;  %v3062_v23 = vpop.f32.mrb[13].mxu0 }
 0x196   : > { %v3188_v39 = vadd.f32 %v3187_v17, %v3173_v13  ;;  %v3979_v24 = vadd.f32 %v3062_v23, %v1813_v1  ;;  %v3151_v25 = vadd.f32 %v3976_v0, %v3150_v15  ;;  %v3963_v26 = vpop.f32.mrb[14].mxu0 }
 0x197   : > { %3139 = vst [vmem:[%s5089_s27 + $0x70] sm:$0xff] %v3978_v22  ;;  %v3980_v27 = vadd.f32 %v3963_v26, %v3891_v11  ;;  %v3065_v36 = vpop.f32.mrb[15].mxu0 }
 0x198   : > { %3137 = vst [vmem:[%s5089_s27 + $0x60] sm:$0xff] %v3979_v24  ;;  %v3152_v42 = vadd.f32 %v3979_v24, %v3151_v25  ;;  %v3175_v28 = vmul.f32 %v3979_v24, %v3979_v24  ;;  %v3189_v14 = vadd.f32 %v3188_v39, %v3174_v43  ;;  %v3981_v29 = vadd.f32 %v3065_v36, %v1816_v7 }
 0x199   : > { %3140 = vst [vmem:[%s5089_s27 + $0x78] sm:$0xff] %v3980_v27 }
 0x19a   : > { %v3190_v30 = vadd.f32 %v3189_v14, %v3175_v28  ;;  %3138 = vst [vmem:[%s5089_s27 + $0x68] sm:$0xff] %v3981_v29  ;;  %v3153_v31 = vadd.f32 %v3981_v29, %v3152_v42  ;;  %v3176_v32 = vmul.f32 %v3981_v29, %v3981_v29 }
 0x19b   : > { %4227 = shalt.err (!%p4224_p7)
}
 0x19c   : > { %s4228_s27 = scalar_lea.hbm %s5113_s30, 2048  ;;  %s4232_s13 = scalar_lea.hbm %s5246_s2, 8192 }
 0x19d   : > { %p4229_p9 = scmp.ne.s32.totalorder %s5113_s30, %s4228_s27  ;;  %p4233_p12 = scmp.lt.u32.totalorder %s5113_s30, %s5246_s2 }
 0x19e   : > { %p4234_p13 = scmp.lt.u32.totalorder %s4232_s13, %s4228_s27  ;;  %p4236_p1 = scmp.lt.u32.totalorder %s4228_s27, %s5113_s30 }
 0x19f   : > { %p4230_p10 = pnand %p4229_p9, %p4453_p3 }
 0x1a0   : > { %p4235_p0 = por %p4234_p13, %p4233_p12 }
 0x1a1   : > { %p4231_p11 = pneg %p4230_p10 }
 0x1a2   : > { %p4237_p2 = por %p4236_p1, %p4235_p0 }
 0x1a4   : > { %p4238_p4 = pnand %p4237_p2, %p4231_p11 }
 0x1a6   : > { %4241 = shalt.err (!%p4238_p4)
}
 0x1a7   : > { %s4371_s24 = smov 128   ;;  %s4372_s6 = smov 8   ;;  %v3177_v37 = vmul.f32 %v3978_v22, %v3978_v22  ;;  %v3154_v40 = vadd.f32 %v3978_v22, %v3153_v31  ;;  %v3191_v48 = vadd.f32 %v3190_v30, %v3176_v32  ;;  %v3178_v54 = vmul.f32 %v3980_v27, %v3980_v27 }
 0x1a8   : > { %4106 = dma.vmem_to_hbm [thread:$0]  (%p4453_p3), %s5107_s10, 2048, %s5113_s30, %s3202_s5, %s4371_s24, %s4371_s24, %s4372_s6  }
 0x1a9   : > { %v3155_v41 = vadd.f32 %v3980_v27, %v3154_v40  ;;  %v3192_v44 = vadd.f32 %v3191_v48, %v3177_v37  ;;  %s3714_s27 = sshll.u32 %s4356_s19, 1  ;;  %s5145_s10 = sand.u32 1, %s3398_s23  }
 0x1aa   : > { %s3240_s11 = sadd.s32 %s4352_s18, %s3714_s27  ;;  %s228_s5 = scalar_lea.vmem [#allocation5], %s5086_s14 }
 0x1ab   : > { %v3156_v33 = vrot.slane %v3155_v41, 4  ;;  %v3193_v45 = vadd.f32 %v3192_v44, %v3178_v54  ;;  %s3715_s30 = sshll.u32 %s3240_s11, 4  ;;  %s3244_s12 = sshll.u32 %s228_s5, 4  ;;  %s5156_s12 = int_to_ptr.vmem [resolvable:$true] %s3244_s12 }
 0x1ac   : > { %s5250_s13 = scalar_lea.vmem [#allocation7], %s5086_s14  ;;  %s5154_s18 = scalar_lea.hbm %s5247_s3, %s3715_s30 }
 0x1ad   : > { %v3194_v46 = vrot.slane %v3193_v45, 4  ;;  %v3157_v49 = vadd.f32 %v3156_v33, %v3155_v41  ;;  %s3259_s19 = sshll.u32 %s5250_s13, 4  ;;  %s5161_s6 = scalar_lea.hbm %s5248_s4, %s3715_s30  ;;  %s5163_s19 = int_to_ptr.vmem [resolvable:$true] %s3259_s19 }
 0x1ae   : > { %s3207_s27 = scalar_lea.sflag [#allocation6], %s5145_s10  ;;  %s4242_s11 = scalar_lea.vmem %s5156_s12, 16 }
 0x1af   : > { %v3158_v4 = vrot.slane %v3157_v49, 2  ;;  %v3195_v50 = vadd.f32 %v3194_v46, %v3193_v45  ;;  %p4243_p5 = scmp.ne.s32.totalorder %s5156_s12, %s4242_s11  ;;  %s4373_s8 = smov [#allocation5]  }
 0x1b0   : > { %s4246_s9 = sshll.u32 %s4373_s8, 4  ;;  %s4247_s9 = int_to_ptr.vmem [resolvable:$false] %s4246_s9 }
 0x1b1   : > { %v3159_v51 = vadd.f32 %v3158_v4, %v3157_v49  ;;  %v3196_v52 = vrot.slane %v3195_v50, 2  ;;  %p4244_p6 = pnand %p4243_p5, %p4453_p3  ;;  %s4248_s13 = scalar_lea.vmem %s4247_s9, 32 }
 0x1b2   : > { %p4249_p9 = scmp.lt.s32.totalorder %s5156_s12, %s4247_s9  ;;  %p4250_p10 = scmp.lt.s32.totalorder %s4248_s13, %s4242_s11 }
 0x1b3   : > { %v3160_v53 = vrot.slane %v3159_v51, 1  ;;  %v3197_v34 = vadd.f32 %v3196_v52, %v3195_v50  ;;  %p4245_p7 = pneg %p4244_p6 }
 0x1b4   : > { %p4251_p11 = por %p4250_p10, %p4249_p9 }
 0x1b5   : > { %v3161_v55 = vadd.f32 %v3160_v53, %v3159_v51  ;;  %v3198_v56 = vrot.slane %v3197_v34, 1 }
 0x1b6   : > { %p4252_p12 = pnand %p4251_p11, %p4245_p7 }
 0x1b7   : > { %3162 = vst [vmem:[%s228_s5] sm:$0x1] %v3161_v55  ;;  %v3199_v57 = vadd.f32 %v3198_v56, %v3197_v34 }
 0x1b8   : > { %4255 = shalt.err (!%p4252_p12)
}
 0x1b9   : > { %s4256_s30 = scalar_lea.hbm %s5154_s18, 16  ;;  %s4260_s24 = scalar_lea.hbm %s5247_s3, 64 }
 0x1ba   : > { %p4257_p13 = scmp.ne.s32.totalorder %s5154_s18, %s4256_s30  ;;  %p4261_p2 = scmp.lt.u32.totalorder %s5154_s18, %s5247_s3 }
 0x1bb   : > { %p4262_p4 = scmp.lt.u32.totalorder %s4260_s24, %s4256_s30  ;;  %p4264_p6 = scmp.lt.u32.totalorder %s4256_s30, %s5154_s18 }
 0x1bc   : > { %p4258_p0 = pnand %p4257_p13, %p4453_p3 }
 0x1bd   : > { %p4263_p5 = por %p4262_p4, %p4261_p2 }
 0x1be   : > { %p4259_p1 = pneg %p4258_p0 }
 0x1bf   : > { %p4265_p7 = por %p4264_p6, %p4263_p5 }
 0x1c1   : > { %p4266_p9 = pnand %p4265_p7, %p4259_p1 }
 0x1c3   : > { %4269 = shalt.err (!%p4266_p9)
}
 0x1c4   : > { %4107 = dma.vmem_to_hbm [thread:$0]  (%p4453_p3), %s5156_s12, 16, %s5154_s18, %s3207_s27  }
 0x1c5   : > { %s5257_s13 = scalar_lea.vmem [#allocation7], %s5086_s14  ;;  %s4270_s11 = scalar_lea.vmem %s5163_s19, 16 }
 0x1c6   : > { %3200 = vst [vmem:[%s5257_s13] sm:$0x1] %v3199_v57  ;;  %p4271_p10 = scmp.ne.s32.totalorder %s5163_s19, %s4270_s11  ;;  %s4374_s30 = smov [#allocation7]  }
 0x1c7   : > { %s4274_s5 = sshll.u32 %s4374_s30, 4  ;;  %s4275_s5 = int_to_ptr.vmem [resolvable:$false] %s4274_s5 }
 0x1c8   : > { %p4272_p11 = pnand %p4271_p10, %p4453_p3  ;;  %s4276_s23 = scalar_lea.vmem %s4275_s5, 32 }
 0x1c9   : > { %p4277_p13 = scmp.lt.s32.totalorder %s5163_s19, %s4275_s5  ;;  %p4278_p0 = scmp.lt.s32.totalorder %s4276_s23, %s4270_s11 }
 0x1ca   : > { %p4273_p12 = pneg %p4272_p11 }
 0x1cb   : > { %p4279_p1 = por %p4278_p0, %p4277_p13 }
 0x1cd   : > { %p4280_p2 = pnand %p4279_p1, %p4273_p12 }
 0x1cf   : > { %4283 = shalt.err (!%p4280_p2)
}
 0x1d0   : > { %s4284_s14 = scalar_lea.hbm %s5161_s6, 16  ;;  %s4288_s24 = scalar_lea.hbm %s5248_s4, 64 }
 0x1d1   : > { %p4285_p4 = scmp.ne.s32.totalorder %s5161_s6, %s4284_s14  ;;  %p4289_p7 = scmp.lt.u32.totalorder %s5161_s6, %s5248_s4 }
 0x1d2   : > { %p4290_p9 = scmp.lt.u32.totalorder %s4288_s24, %s4284_s14  ;;  %p4292_p11 = scmp.lt.u32.totalorder %s4284_s14, %s5161_s6 }
 0x1d3   : > { %p4286_p5 = pnand %p4285_p4, %p4453_p3 }
 0x1d4   : > { %p4291_p10 = por %p4290_p9, %p4289_p7 }
 0x1d5   : > { %p4287_p6 = pneg %p4286_p5 }
 0x1d6   : > { %p4293_p12 = por %p4292_p11, %p4291_p10 }
 0x1d8   : > { %p4294_p13 = pnand %p4293_p12, %p4287_p6 }
 0x1da   : > { %4297 = shalt.err (!%p4294_p13)
}
 0x1db   : > { %4108 = dma.vmem_to_hbm [thread:$0]  (%p4453_p3), %s5163_s19, 16, %s5161_s6, %s3207_s27  }
 0x1dc PF: > { %p4122_p0 = scmp.ge.s32.totalorder %s4368_s22, 2  ;;  %s3271_s13 = sand.u32 1, %s4340_s15  }
 0x1dd   : > { %s3272_s11 = scalar_lea.sflag [#allocation4], %s3271_s13 }
 0x1de   : > { %p4113_p1 = pnand %p4122_p0, %p4464_p8 }
 0x1e0   : > { %4331 = dma.done.wait (!%p4113_p1), %s3272_s11, 2048  }
 0x1e1   : > { %4333 = vsyncadd (!%p4113_p1), %s3272_s11, 4294965248  ;;  %s5258_s30 = sadd.s32 4294967294, %s4368_s22  }
 0x1e2   : > { %s3280_s5 = sand.u32 1, %s5258_s30  }
 0x1e3   : > { %s3281_s28 = scalar_lea.sflag [#allocation6], %s3280_s5 }
 0x1e4   : > { %4335 = dma.done.wait (!%p4113_p1), %s3281_s28, 32  }
 0x1e5   : > { %4337 = vsyncadd (!%p4113_p1), %s3281_s28, 4294967264  ;;  %s21_s22 = sadd.s32 1, %s4368_s22   ;;  %s5259_s15 = smov %s4344_s16 }
 0x1e6   : > { %p18_p3 = scmp.ge.s32.totalorder %s21_s22, 6   ;;  %s5260_s16 = smov %s4348_s17 }
 0x1e7   : > { %s5261_s17 = smov %s4473_s7  ;;  %s5262_s18 = smov %s4360_s20 }
 0x1e8   : > { %s5263_s19 = smov %s4364_s21  ;;  %s5264_s20 = smov %s5267_s25 }
 0x1e9   : > { %s5265_s21 = smov %s5271_s26  ;;  %20 = sbr.rel (!%p18_p3) target bundleno = 7 (0x7), region = 105 }
 0x1f0   :  { %3293 = vsyncpa [#allocation4], 1 }
 0x1f1   :  { %3295 = vsyncpa [#allocation4 + $0x1], 1 }
 0x1f2   :  { %3296 = vsyncpa [#allocation6], 1 }
 0x1f3   :  { %3298 = vsyncpa [#allocation6 + $0x1], 1 }

</bundles_post_ra>
